<compile_context>
chip_gen: v6e
topology: v6e:2x2x1
jax: 0.10.0
libtpu: 0.0.40
codegen_flags: <defaults>
</compile_context>

<pallas_src>
import functools
import math

import jax
import jax.numpy as jnp
from jax import lax
from jax.experimental import pallas as pl
from jax.experimental.pallas import tpu as pltpu

_HIGHEST = jax.lax.Precision.HIGHEST


def _ntm_write_head_kernel(emb_ref, W_ref, b_ref, wprev_ref, mem_ref,
                           seg_ref, rep_ref, tile_ref,
                           wout_ref, memout_ref, *, N, M):
    f32 = jnp.float32

    # fc_write on the MXU; L padded to a full 128-lane width in the wrapper so
    # the matmul result is unmasked.
    x = jnp.dot(emb_ref[...], W_ref[...], precision=_HIGHEST,
                preferred_element_type=f32) + b_ref[...]              # (TB, Lp)

    k     = x[:, 0:M]                                                 # (TB, M)
    beta  = jax.nn.softplus(x[:, M:M + 1])                            # (TB, 1)
    g     = jax.nn.sigmoid(x[:, M + 1:M + 2])                         # (TB, 1)
    s     = jax.nn.softmax(x[:, M + 2:M + 5], axis=1)                 # (TB, 3)
    gamma = 1.0 + jax.nn.softplus(x[:, M + 5:M + 6])                  # (TB, 1)
    e     = jax.nn.sigmoid(x[:, M + 6:2 * M + 6])                     # (TB, M)
    a     = x[:, 2 * M + 6:3 * M + 6]                                 # (TB, M)

    # Hoisted, loop-invariant 0/1 selection matrices.  Their block index never
    # changes so they are DMA'd once and stay resident in VMEM.
    seg_sum = seg_ref[...]      # (N*M, N): sums each group of M lanes
    rep_n   = rep_ref[...]      # (N, N*M): repeats w[:, n] M times
    tile_m  = tile_ref[...]     # (M, N*M): tiles an M-vector N times

    mem = mem_ref[...]                                                # (TB, N*M)

    # --- content addressing: softmax over N of beta * cosine_sim(mem, k) ---
    # NOTE: selection matmuls kept at HIGHEST (see header) — bf16x3's split
    # residual is marginal against the 1e-5 validation tolerance.
    mq = mem + 1e-16
    kq = k + 1e-16
    kq_flat = jnp.dot(kq, tile_m, precision=_HIGHEST,
                      preferred_element_type=f32)                     # (TB, N*M)
    dots = jnp.dot(mq * kq_flat, seg_sum, precision=_HIGHEST,
                   preferred_element_type=f32)                        # (TB, N)
    nm2 = jnp.dot(mq * mq, seg_sum, precision=_HIGHEST,
                  preferred_element_type=f32)                         # (TB, N)
    nk2 = jnp.sum(kq * kq, axis=1, keepdims=True)                     # (TB, 1)
    # max(|m||k|, 1e-8) == sqrt(max(|m|^2 |k|^2, 1e-16)); rsqrt runs on the EUP.
    cos = dots * lax.rsqrt(jnp.maximum(nm2 * nk2, 1e-16))
    zc = beta * cos
    pc = jnp.exp(zc - jnp.max(zc, axis=1, keepdims=True))
    wc = pc * pl.reciprocal(jnp.sum(pc, axis=1, keepdims=True), approx=False)

    # --- interpolation with previous weights ---
    wg = g * wc + (1.0 - g) * wprev_ref[...]                          # (TB, N)

    # --- circular shift with 3-tap kernel s (s[0] -> shift -1 neighbour) ---
    w_m1 = jnp.concatenate([wg[:, N - 1:N], wg[:, 0:N - 1]], axis=1)  # wg[i-1]
    w_p1 = jnp.concatenate([wg[:, 1:N], wg[:, 0:1]], axis=1)          # wg[i+1]
    ws = w_m1 * s[:, 0:1] + wg * s[:, 1:2] + w_p1 * s[:, 2:3]

    # --- sharpening (denominator via EUP reciprocal) ---
    wp = ws ** gamma
    w = wp * pl.reciprocal(jnp.sum(wp, axis=1, keepdims=True) + 1e-16,
                           approx=False)
    # Lane-narrow (N=16) masked store: accepted, noise vs the (TB, N*M) write.
    wout_ref[...] = w

    # --- fused, lane-dense, in-place memory write ---
    # mem * (1 - w e^T) + w a^T  ==  mem + w * (a - mem * e)
    w_flat = jnp.dot(w, rep_n, precision=_HIGHEST, preferred_element_type=f32)
    e_flat = jnp.dot(e, tile_m, precision=_HIGHEST, preferred_element_type=f32)
    a_flat = jnp.dot(a, tile_m, precision=_HIGHEST, preferred_element_type=f32)
    memout_ref[...] = mem + w_flat * (a_flat - mem * e_flat)


def _pick_tb(B):
    """Batch-tile size: a multiple of 8 dividing B, capped at 512, preferring
    >=4 grid steps (DMA pipelining / v7x two-core split).  Small or odd
    batches fall back to one full-array block (block dims equal to the array
    dims are always legal)."""
    if B % 8 != 0:
        return B
    divs = [d for d in range(8, min(512, B) + 1, 8) if B % d == 0]
    if not divs:
        return B
    for min_steps in (4, 2, 1):
        ok = [d for d in divs if B // d >= min_steps]
        if ok:
            return max(ok)
    return max(divs)


@functools.partial(jax.jit, static_argnums=(5, 6), donate_argnums=(4,))
def _ntm_write_head_jit(emb, W, b, w_prev, mem_flat, N, M):
    B, C = emb.shape
    NM = N * M
    L = 3 * M + 6
    LP = pl.cdiv(L, 128) * 128          # pad fc_write output width to full lanes

    W_pad = jnp.zeros((C, LP), jnp.float32).at[:, :L].set(W)
    b_pad = jnp.zeros((1, LP), jnp.float32).at[:, :L].set(b)

    # Loop-invariant 0/1 selection matrices, hoisted out of the kernel
    # (constant-folded by XLA, DMA'd into VMEM once).
    r0 = lax.broadcasted_iota(jnp.int32, (NM, N), 0)
    c0 = lax.broadcasted_iota(jnp.int32, (NM, N), 1)
    seg_sum = (r0 // M == c0).astype(jnp.float32)   # (NM, N)
    r1 = lax.broadcasted_iota(jnp.int32, (N, NM), 0)
    c1 = lax.broadcasted_iota(jnp.int32, (N, NM), 1)
    rep_n = (c1 // M == r1).astype(jnp.float32)     # (N, NM)
    r2 = lax.broadcasted_iota(jnp.int32, (M, NM), 0)
    c2 = lax.broadcasted_iota(jnp.int32, (M, NM), 1)
    tile_m = (c2 % M == r2).astype(jnp.float32)     # (M, NM)

    TB = _pick_tb(B)
    grid = (B // TB,)

    kern = functools.partial(_ntm_write_head_kernel, N=N, M=M)
    w_out, mem_out = pl.pallas_call(
        kern,
        grid=grid,
        in_specs=[
            pl.BlockSpec((TB, C), lambda i: (i, 0)),      # embeddings
            pl.BlockSpec((C, LP), lambda i: (0, 0)),      # fc_write weight
            pl.BlockSpec((1, LP), lambda i: (0, 0)),      # fc_write bias
            pl.BlockSpec((TB, N), lambda i: (i, 0)),      # w_prev
            pl.BlockSpec((TB, NM), lambda i: (i, 0)),     # memory (lane-dense)
            pl.BlockSpec((NM, N), lambda i: (0, 0)),      # seg_sum (resident)
            pl.BlockSpec((N, NM), lambda i: (0, 0)),      # rep_n   (resident)
            pl.BlockSpec((M, NM), lambda i: (0, 0)),      # tile_m  (resident)
        ],
        out_specs=(
            pl.BlockSpec((TB, N), lambda i: (i, 0)),
            pl.BlockSpec((TB, NM), lambda i: (i, 0)),
        ),
        out_shape=(jax.ShapeDtypeStruct((B, N), jnp.float32),
                   jax.ShapeDtypeStruct((B, NM), jnp.float32)),
        # memory (input 4) is written back in place, like PyTorch's
        # self.memory.memory mutation; realized because mem_flat is donated.
        input_output_aliases={4: 1},
        compiler_params=pltpu.CompilerParams(
            dimension_semantics=("parallel",)),
    )(emb, W_pad, b_pad, w_prev, mem_flat, seg_sum, rep_n, tile_m)
    return w_out, mem_out


def ntm_write_head(embeddings, W, b, w_prev, memory):
    """embeddings (B,C); W (C,L) [fc_write weight transposed]; b (1,L);
    w_prev (B,N); memory (B,N,M).  Returns (weights (B,N), written memory).
    The lane-dense memory buffer is donated so the write is in place."""
    B, _ = embeddings.shape
    _, N, M = memory.shape
    # (B,N,M) -> (B,N*M) is a free row-major reshape; done eagerly so the
    # donated buffer is a fresh lane-dense array (no aliasing surprises).
    mem_flat = memory.reshape(B, N * M)
    w, new_mem = _ntm_write_head_jit(embeddings, W, b, w_prev, mem_flat, N, M)
    return w, new_mem.reshape(B, N, M)


def _reference(embeddings, W, b, w_prev, memory):
    """Pure-JAX reference of the same forward pass (for validation)."""
    _, N, M = memory.shape
    x = jnp.dot(embeddings, W, precision=_HIGHEST) + b
    k, beta, g, s, gamma, e, a = (x[:, 0:M], x[:, M:M + 1], x[:, M + 1:M + 2],
                                  x[:, M + 2:M + 5], x[:, M + 5:M + 6],
                                  x[:, M + 6:2 * M + 6], x[:, 2 * M + 6:])
    beta = jax.nn.softplus(beta)
    g = jax.nn.sigmoid(g)
    s = jax.nn.softmax(s, axis=1)
    gamma = 1.0 + jax.nn.softplus(gamma)
    e = jax.nn.sigmoid(e)

    mq = memory + 1e-16
    kq = k[:, None, :] + 1e-16
    cos = jnp.sum(mq * kq, -1) / jnp.maximum(
        jnp.linalg.norm(mq, axis=-1) * jnp.linalg.norm(kq, axis=-1), 1e-8)
    wc = jax.nn.softmax(beta * cos, axis=1)
    wg = g * wc + (1 - g) * w_prev
    ws = (jnp.roll(wg, 1, axis=1) * s[:, 0:1] + wg * s[:, 1:2]
          + jnp.roll(wg, -1, axis=1) * s[:, 2:3])
    wp = ws ** gamma
    w = wp / (jnp.sum(wp, axis=1, keepdims=True) + 1e-16)
    new_mem = (memory * (1 - w[:, :, None] * e[:, None, :])
               + w[:, :, None] * a[:, None, :])
    return w, new_mem


if __name__ == "__main__":
    def _run_case(case_key, B, C, N, M, random_wprev):
        L = 3 * M + 6
        k_emb, k_w, k_b, k_mem, k_wp = jax.random.split(case_key, 5)

        # fc_write params: xavier_uniform(gain=1.4) weight (L,C), normal(0.01) bias.
        bound = 1.4 * math.sqrt(6.0 / (C + L))
        W_torch = jax.random.uniform(k_w, (L, C), jnp.float32, -bound, bound)
        W = W_torch.T                                          # stored (C, L)
        b = (0.01 * jax.random.normal(k_b, (L,), jnp.float32)).reshape(1, L)

        # NTMMemory init: uniform(-1/sqrt(N+M), 1/sqrt(N+M)), repeated over batch.
        stdev = 1.0 / math.sqrt(N + M)
        mem_bias = jax.random.uniform(k_mem, (N, M), jnp.float32, -stdev, stdev)
        memory = jnp.broadcast_to(mem_bias, (B, N, M)).astype(jnp.float32)

        embeddings = jax.random.normal(k_emb, (B, C), jnp.float32)
        if random_wprev:
            w_prev = jax.nn.softmax(jax.random.normal(k_wp, (B, N), jnp.float32),
                                    axis=1)
        else:
            w_prev = jnp.zeros((B, N), jnp.float32)            # create_new_state

        # Reference first (the kernel donates/aliases its memory buffer).
        w_ref, mem_ref_out = _reference(embeddings, W, b, w_prev, memory)

        weights, new_memory = ntm_write_head(embeddings, W, b, w_prev, memory)
        jax.block_until_ready((weights, new_memory))

        assert jnp.allclose(weights, w_ref, rtol=1e-5, atol=1e-5)
        assert jnp.allclose(new_memory, mem_ref_out, rtol=1e-5, atol=1e-5)

    key = jax.random.PRNGKey(0)
    k0, k1 = jax.random.split(key, 2)

    # Tiny shape matching the module defaults (controller_size=32, N=16, M=8).
    _run_case(k0, B=2, C=32, N=16, M=8, random_wprev=False)
    # Batch-tiled path: B=64 -> TB=16, 4-step "parallel" grid, donated memory.
    _run_case(k1, B=64, C=32, N=16, M=8, random_wprev=True)

    print("KERNEL_OK")
</pallas_src>

<mosaic_0001>
module attributes {stable_mosaic.version = 11 : i64} {
  func.func @_ntm_write_head_kernel(%arg0: i32, %arg1: memref<2x32xf32, #tpu.memory_space<vmem>>, %arg2: memref<32x128xf32, #tpu.memory_space<vmem>>, %arg3: memref<1x128xf32, #tpu.memory_space<vmem>>, %arg4: memref<2x16xf32, #tpu.memory_space<vmem>>, %arg5: memref<2x128xf32, #tpu.memory_space<vmem>>, %arg6: memref<128x16xf32, #tpu.memory_space<vmem>>, %arg7: memref<16x128xf32, #tpu.memory_space<vmem>>, %arg8: memref<8x128xf32, #tpu.memory_space<vmem>>, %arg9: memref<2x16xf32, #tpu.memory_space<vmem>>, %arg10: memref<2x128xf32, #tpu.memory_space<vmem>>) attributes {dimension_semantics = [#tpu.dimension_semantics<parallel>], iteration_bounds = array<i64: 1>, scalar_prefetch = 0 : i64, scratch_operands = 0 : i64, tpu.core_type = #tpu.core_type<tc>, window_params = [{transform_indices = @transform_0, window_bounds = array<i64: 2, 32>}, {pipeline_mode = #tpu.pipeline_mode<synchronous>, transform_indices = @transform_1, window_bounds = array<i64: 32, 128>}, {pipeline_mode = #tpu.pipeline_mode<synchronous>, transform_indices = @transform_2, window_bounds = array<i64: 1, 128>}, {transform_indices = @transform_3, window_bounds = array<i64: 2, 16>}, {transform_indices = @transform_4, window_bounds = array<i64: 2, 128>}, {pipeline_mode = #tpu.pipeline_mode<synchronous>, transform_indices = @transform_5, window_bounds = array<i64: 128, 16>}, {pipeline_mode = #tpu.pipeline_mode<synchronous>, transform_indices = @transform_6, window_bounds = array<i64: 16, 128>}, {pipeline_mode = #tpu.pipeline_mode<synchronous>, transform_indices = @transform_7, window_bounds = array<i64: 8, 128>}, {transform_indices = @transform_8, window_bounds = array<i64: 2, 16>}, {transform_indices = @transform_9, window_bounds = array<i64: 2, 128>}]} {
    %c0 = arith.constant 0 : index
    %c0_0 = arith.constant 0 : index
    %0 = vector.load %arg1[%c0, %c0_0] : memref<2x32xf32, #tpu.memory_space<vmem>>, vector<2x32xf32>
    %c0_1 = arith.constant 0 : index
    %c0_2 = arith.constant 0 : index
    %1 = vector.load %arg2[%c0_1, %c0_2] : memref<32x128xf32, #tpu.memory_space<vmem>>, vector<32x128xf32>
    %cst = arith.constant dense<0.000000e+00> : vector<2x128xf32>
    %2 = tpu.matmul %0, %1, %cst {dimension_numbers = #tpu.dot_dimension_numbers<[1], [0], [0], [1], [0, 0, 1, 1], [], []>, precision = #tpu.contract_precision<fp32>} : vector<2x32xf32>, vector<32x128xf32>, vector<2x128xf32> -> vector<2x128xf32>
    %c0_3 = arith.constant 0 : index
    %c0_4 = arith.constant 0 : index
    %3 = vector.load %arg3[%c0_3, %c0_4] : memref<1x128xf32, #tpu.memory_space<vmem>>, vector<1x128xf32>
    %4 = vector.broadcast %3 : vector<1x128xf32> to vector<2x128xf32>
    %5 = arith.addf %2, %4 : vector<2x128xf32>
    %6 = vector.extract_strided_slice %5 {offsets = [0, 0], sizes = [2, 8], strides = [1, 1]} : vector<2x128xf32> to vector<2x8xf32>
    %7 = vector.extract_strided_slice %5 {offsets = [0, 8], sizes = [2, 1], strides = [1, 1]} : vector<2x128xf32> to vector<2x1xf32>
    %cst_5 = arith.constant 0.000000e+00 : f32
    %8 = vector.broadcast %cst_5 : f32 to vector<2x1xf32>
    %9 = arith.maximumf %7, %8 : vector<2x1xf32>
    %10 = vector.broadcast %cst_5 : f32 to vector<2x1xf32>
    %11 = arith.subf %7, %10 : vector<2x1xf32>
    %12 = arith.cmpf one, %11, %11 : vector<2x1xf32>
    %13 = vector.broadcast %cst_5 : f32 to vector<2x1xf32>
    %14 = arith.addf %7, %13 : vector<2x1xf32>
    %15 = math.absf %11 : vector<2x1xf32>
    %cst_6 = arith.constant 0.000000e+00 : f32
    %16 = vector.broadcast %cst_6 : f32 to vector<2x1xf32>
    %17 = arith.subf %16, %15 : vector<2x1xf32>
    %18 = math.exp %17 : vector<2x1xf32>
    %19 = math.log1p %18 : vector<2x1xf32>
    %20 = arith.addf %9, %19 : vector<2x1xf32>
    %21 = arith.select %12, %14, %20 : vector<2x1xi1>, vector<2x1xf32>
    %22 = vector.extract_strided_slice %5 {offsets = [0, 9], sizes = [2, 1], strides = [1, 1]} : vector<2x128xf32> to vector<2x1xf32>
    %23 = arith.negf %22 : vector<2x1xf32>
    %24 = math.exp %23 : vector<2x1xf32>
    %cst_7 = arith.constant 1.000000e+00 : f32
    %25 = vector.broadcast %cst_7 : f32 to vector<2x1xf32>
    %26 = arith.addf %25, %24 : vector<2x1xf32>
    %27 = arith.divf %25, %26 : vector<2x1xf32>
    %28 = vector.extract_strided_slice %5 {offsets = [0, 10], sizes = [2, 3], strides = [1, 1]} : vector<2x128xf32> to vector<2x3xf32>
    %cst_8 = arith.constant dense<0xFF800000> : vector<2xf32>
    %29 = vector.multi_reduction <maximumf>, %28, %cst_8 [1] : vector<2x3xf32> to vector<2xf32>
    %cst_9 = arith.constant 0xFF800000 : f32
    %30 = vector.broadcast %cst_9 : f32 to vector<2xf32>
    %31 = arith.maximumf %30, %29 : vector<2xf32>
    %32 = vector.shape_cast %31 : vector<2xf32> to vector<2x1xf32>
    %33 = vector.broadcast %32 : vector<2x1xf32> to vector<2x3xf32>
    %34 = arith.subf %28, %33 : vector<2x3xf32>
    %35 = math.exp %34 : vector<2x3xf32>
    %cst_10 = arith.constant dense<0.000000e+00> : vector<2xf32>
    %36 = vector.multi_reduction <add>, %35, %cst_10 [1] : vector<2x3xf32> to vector<2xf32>
    %37 = vector.shape_cast %36 : vector<2xf32> to vector<2x1xf32>
    %38 = vector.broadcast %37 : vector<2x1xf32> to vector<2x3xf32>
    %39 = arith.divf %35, %38 : vector<2x3xf32>
    %40 = vector.extract_strided_slice %5 {offsets = [0, 13], sizes = [2, 1], strides = [1, 1]} : vector<2x128xf32> to vector<2x1xf32>
    %cst_11 = arith.constant 0.000000e+00 : f32
    %41 = vector.broadcast %cst_11 : f32 to vector<2x1xf32>
    %42 = arith.maximumf %40, %41 : vector<2x1xf32>
    %43 = vector.broadcast %cst_11 : f32 to vector<2x1xf32>
    %44 = arith.subf %40, %43 : vector<2x1xf32>
    %45 = arith.cmpf one, %44, %44 : vector<2x1xf32>
    %46 = vector.broadcast %cst_11 : f32 to vector<2x1xf32>
    %47 = arith.addf %40, %46 : vector<2x1xf32>
    %48 = math.absf %44 : vector<2x1xf32>
    %cst_12 = arith.constant 0.000000e+00 : f32
    %49 = vector.broadcast %cst_12 : f32 to vector<2x1xf32>
    %50 = arith.subf %49, %48 : vector<2x1xf32>
    %51 = math.exp %50 : vector<2x1xf32>
    %52 = math.log1p %51 : vector<2x1xf32>
    %53 = arith.addf %42, %52 : vector<2x1xf32>
    %54 = arith.select %45, %47, %53 : vector<2x1xi1>, vector<2x1xf32>
    %cst_13 = arith.constant 1.000000e+00 : f32
    %55 = vector.broadcast %cst_13 : f32 to vector<2x1xf32>
    %56 = arith.addf %55, %54 : vector<2x1xf32>
    %57 = vector.extract_strided_slice %5 {offsets = [0, 14], sizes = [2, 8], strides = [1, 1]} : vector<2x128xf32> to vector<2x8xf32>
    %58 = arith.negf %57 : vector<2x8xf32>
    %59 = math.exp %58 : vector<2x8xf32>
    %cst_14 = arith.constant 1.000000e+00 : f32
    %60 = vector.broadcast %cst_14 : f32 to vector<2x8xf32>
    %61 = arith.addf %60, %59 : vector<2x8xf32>
    %62 = arith.divf %60, %61 : vector<2x8xf32>
    %63 = vector.extract_strided_slice %5 {offsets = [0, 22], sizes = [2, 8], strides = [1, 1]} : vector<2x128xf32> to vector<2x8xf32>
    %c0_15 = arith.constant 0 : index
    %c0_16 = arith.constant 0 : index
    %64 = vector.load %arg6[%c0_15, %c0_16] : memref<128x16xf32, #tpu.memory_space<vmem>>, vector<128x16xf32>
    %c0_17 = arith.constant 0 : index
    %c0_18 = arith.constant 0 : index
    %65 = vector.load %arg7[%c0_17, %c0_18] : memref<16x128xf32, #tpu.memory_space<vmem>>, vector<16x128xf32>
    %c0_19 = arith.constant 0 : index
    %c0_20 = arith.constant 0 : index
    %66 = vector.load %arg8[%c0_19, %c0_20] : memref<8x128xf32, #tpu.memory_space<vmem>>, vector<8x128xf32>
    %c0_21 = arith.constant 0 : index
    %c0_22 = arith.constant 0 : index
    %67 = vector.load %arg5[%c0_21, %c0_22] : memref<2x128xf32, #tpu.memory_space<vmem>>, vector<2x128xf32>
    %cst_23 = arith.constant 1.000000e-16 : f32
    %68 = vector.broadcast %cst_23 : f32 to vector<2x128xf32>
    %69 = arith.addf %67, %68 : vector<2x128xf32>
    %cst_24 = arith.constant 1.000000e-16 : f32
    %70 = vector.broadcast %cst_24 : f32 to vector<2x8xf32>
    %71 = arith.addf %6, %70 : vector<2x8xf32>
    %cst_25 = arith.constant dense<0.000000e+00> : vector<2x128xf32>
    %72 = tpu.matmul %71, %66, %cst_25 {dimension_numbers = #tpu.dot_dimension_numbers<[1], [0], [0], [1], [0, 0, 1, 1], [], []>, precision = #tpu.contract_precision<fp32>} : vector<2x8xf32>, vector<8x128xf32>, vector<2x128xf32> -> vector<2x128xf32>
    %73 = arith.mulf %69, %72 : vector<2x128xf32>
    %cst_26 = arith.constant dense<0.000000e+00> : vector<2x16xf32>
    %74 = tpu.matmul %73, %64, %cst_26 {dimension_numbers = #tpu.dot_dimension_numbers<[1], [0], [0], [1], [0, 0, 1, 1], [], []>, precision = #tpu.contract_precision<fp32>} : vector<2x128xf32>, vector<128x16xf32>, vector<2x16xf32> -> vector<2x16xf32>
    %75 = arith.mulf %69, %69 : vector<2x128xf32>
    %cst_27 = arith.constant dense<0.000000e+00> : vector<2x16xf32>
    %76 = tpu.matmul %75, %64, %cst_27 {dimension_numbers = #tpu.dot_dimension_numbers<[1], [0], [0], [1], [0, 0, 1, 1], [], []>, precision = #tpu.contract_precision<fp32>} : vector<2x128xf32>, vector<128x16xf32>, vector<2x16xf32> -> vector<2x16xf32>
    %77 = arith.mulf %71, %71 : vector<2x8xf32>
    %cst_28 = arith.constant dense<0.000000e+00> : vector<2xf32>
    %78 = vector.multi_reduction <add>, %77, %cst_28 [1] : vector<2x8xf32> to vector<2xf32>
    %79 = vector.shape_cast %78 : vector<2xf32> to vector<2x1xf32>
    %80 = vector.broadcast %79 : vector<2x1xf32> to vector<2x16xf32>
    %81 = arith.mulf %76, %80 : vector<2x16xf32>
    %cst_29 = arith.constant 1.000000e-16 : f32
    %82 = vector.broadcast %cst_29 : f32 to vector<2x16xf32>
    %83 = arith.maximumf %81, %82 : vector<2x16xf32>
    %84 = math.rsqrt %83 : vector<2x16xf32>
    %85 = arith.mulf %74, %84 : vector<2x16xf32>
    %86 = vector.broadcast %21 : vector<2x1xf32> to vector<2x16xf32>
    %87 = arith.mulf %86, %85 : vector<2x16xf32>
    %cst_30 = arith.constant dense<0xFF800000> : vector<2xf32>
    %88 = vector.multi_reduction <maximumf>, %87, %cst_30 [1] : vector<2x16xf32> to vector<2xf32>
    %89 = vector.shape_cast %88 : vector<2xf32> to vector<2x1xf32>
    %90 = vector.broadcast %89 : vector<2x1xf32> to vector<2x16xf32>
    %91 = arith.subf %87, %90 : vector<2x16xf32>
    %92 = math.exp %91 : vector<2x16xf32>
    %cst_31 = arith.constant dense<0.000000e+00> : vector<2xf32>
    %93 = vector.multi_reduction <add>, %92, %cst_31 [1] : vector<2x16xf32> to vector<2xf32>
    %94 = vector.shape_cast %93 : vector<2xf32> to vector<2x1xf32>
    %95 = tpu.reciprocal %94 : vector<2x1xf32> -> vector<2x1xf32>
    %96 = vector.broadcast %95 : vector<2x1xf32> to vector<2x16xf32>
    %97 = arith.mulf %92, %96 : vector<2x16xf32>
    %98 = vector.broadcast %27 : vector<2x1xf32> to vector<2x16xf32>
    %99 = arith.mulf %98, %97 : vector<2x16xf32>
    %cst_32 = arith.constant 1.000000e+00 : f32
    %100 = vector.broadcast %cst_32 : f32 to vector<2x1xf32>
    %101 = arith.subf %100, %27 : vector<2x1xf32>
    %c0_33 = arith.constant 0 : index
    %c0_34 = arith.constant 0 : index
    %102 = vector.load %arg4[%c0_33, %c0_34] : memref<2x16xf32, #tpu.memory_space<vmem>>, vector<2x16xf32>
    %103 = vector.broadcast %101 : vector<2x1xf32> to vector<2x16xf32>
    %104 = arith.mulf %103, %102 : vector<2x16xf32>
    %105 = arith.addf %99, %104 : vector<2x16xf32>
    %106 = vector.extract_strided_slice %105 {offsets = [0, 15], sizes = [2, 1], strides = [1, 1]} : vector<2x16xf32> to vector<2x1xf32>
    %107 = vector.extract_strided_slice %105 {offsets = [0, 0], sizes = [2, 15], strides = [1, 1]} : vector<2x16xf32> to vector<2x15xf32>
    %108 = tpu.concatenate %106, %107 in 1 : vector<2x1xf32>, vector<2x15xf32> -> vector<2x16xf32>
    %109 = vector.extract_strided_slice %105 {offsets = [0, 1], sizes = [2, 15], strides = [1, 1]} : vector<2x16xf32> to vector<2x15xf32>
    %110 = vector.extract_strided_slice %105 {offsets = [0, 0], sizes = [2, 1], strides = [1, 1]} : vector<2x16xf32> to vector<2x1xf32>
    %111 = tpu.concatenate %109, %110 in 1 : vector<2x15xf32>, vector<2x1xf32> -> vector<2x16xf32>
    %112 = vector.extract_strided_slice %39 {offsets = [0, 0], sizes = [2, 1], strides = [1, 1]} : vector<2x3xf32> to vector<2x1xf32>
    %113 = vector.broadcast %112 : vector<2x1xf32> to vector<2x16xf32>
    %114 = arith.mulf %108, %113 : vector<2x16xf32>
    %115 = vector.extract_strided_slice %39 {offsets = [0, 1], sizes = [2, 1], strides = [1, 1]} : vector<2x3xf32> to vector<2x1xf32>
    %116 = vector.broadcast %115 : vector<2x1xf32> to vector<2x16xf32>
    %117 = arith.mulf %105, %116 : vector<2x16xf32>
    %118 = arith.addf %114, %117 : vector<2x16xf32>
    %119 = vector.extract_strided_slice %39 {offsets = [0, 2], sizes = [2, 1], strides = [1, 1]} : vector<2x3xf32> to vector<2x1xf32>
    %120 = vector.broadcast %119 : vector<2x1xf32> to vector<2x16xf32>
    %121 = arith.mulf %111, %120 : vector<2x16xf32>
    %122 = arith.addf %118, %121 : vector<2x16xf32>
    %123 = vector.broadcast %56 : vector<2x1xf32> to vector<2x16xf32>
    %124 = math.powf %122, %123 : vector<2x16xf32>
    %cst_35 = arith.constant dense<0.000000e+00> : vector<2xf32>
    %125 = vector.multi_reduction <add>, %124, %cst_35 [1] : vector<2x16xf32> to vector<2xf32>
    %126 = vector.shape_cast %125 : vector<2xf32> to vector<2x1xf32>
    %cst_36 = arith.constant 1.000000e-16 : f32
    %127 = vector.broadcast %cst_36 : f32 to vector<2x1xf32>
    %128 = arith.addf %126, %127 : vector<2x1xf32>
    %129 = tpu.reciprocal %128 : vector<2x1xf32> -> vector<2x1xf32>
    %130 = vector.broadcast %129 : vector<2x1xf32> to vector<2x16xf32>
    %131 = arith.mulf %124, %130 : vector<2x16xf32>
    %c0_37 = arith.constant 0 : index
    %c0_38 = arith.constant 0 : index
    %132 = vector.load %arg9[%c0_37, %c0_38] : memref<2x16xf32, #tpu.memory_space<vmem>>, vector<2x16xf32>
    tpu.vector_store %arg9[%c0_37, %c0_38], %131 {strides = array<i32>} : memref<2x16xf32, #tpu.memory_space<vmem>>, vector<2x16xf32>,
    %cst_39 = arith.constant dense<0.000000e+00> : vector<2x128xf32>
    %133 = tpu.matmul %131, %65, %cst_39 {dimension_numbers = #tpu.dot_dimension_numbers<[1], [0], [0], [1], [0, 0, 1, 1], [], []>, precision = #tpu.contract_precision<fp32>} : vector<2x16xf32>, vector<16x128xf32>, vector<2x128xf32> -> vector<2x128xf32>
    %cst_40 = arith.constant dense<0.000000e+00> : vector<2x128xf32>
    %134 = tpu.matmul %62, %66, %cst_40 {dimension_numbers = #tpu.dot_dimension_numbers<[1], [0], [0], [1], [0, 0, 1, 1], [], []>, precision = #tpu.contract_precision<fp32>} : vector<2x8xf32>, vector<8x128xf32>, vector<2x128xf32> -> vector<2x128xf32>
    %cst_41 = arith.constant dense<0.000000e+00> : vector<2x128xf32>
    %135 = tpu.matmul %63, %66, %cst_41 {dimension_numbers = #tpu.dot_dimension_numbers<[1], [0], [0], [1], [0, 0, 1, 1], [], []>, precision = #tpu.contract_precision<fp32>} : vector<2x8xf32>, vector<8x128xf32>, vector<2x128xf32> -> vector<2x128xf32>
    %136 = arith.mulf %67, %134 : vector<2x128xf32>
    %137 = arith.subf %135, %136 : vector<2x128xf32>
    %138 = arith.mulf %133, %137 : vector<2x128xf32>
    %139 = arith.addf %67, %138 : vector<2x128xf32>
    %c0_42 = arith.constant 0 : index
    %c0_43 = arith.constant 0 : index
    %140 = vector.load %arg10[%c0_42, %c0_43] : memref<2x128xf32, #tpu.memory_space<vmem>>, vector<2x128xf32>
    tpu.vector_store %arg10[%c0_42, %c0_43], %139 {strides = array<i32>} : memref<2x128xf32, #tpu.memory_space<vmem>>, vector<2x128xf32>,
    return
  }
  func.func @transform_0(%arg0: i32) -> (i32, i32) {
    %c0_i32 = arith.constant 0 : i32
    %c0_i32_0 = arith.constant 0 : i32
    return %arg0, %c0_i32 : i32, i32
  }
  func.func @transform_1(%arg0: i32) -> (i32, i32) {
    %c0_i32 = arith.constant 0 : i32
    %c0_i32_0 = arith.constant 0 : i32
    %c0_i32_1 = arith.constant 0 : i32
    return %c0_i32, %c0_i32_0 : i32, i32
  }
  func.func @transform_2(%arg0: i32) -> (i32, i32) {
    %c0_i32 = arith.constant 0 : i32
    %c0_i32_0 = arith.constant 0 : i32
    %c0_i32_1 = arith.constant 0 : i32
    return %c0_i32, %c0_i32_0 : i32, i32
  }
  func.func @transform_3(%arg0: i32) -> (i32, i32) {
    %c0_i32 = arith.constant 0 : i32
    %c0_i32_0 = arith.constant 0 : i32
    return %arg0, %c0_i32 : i32, i32
  }
  func.func @transform_4(%arg0: i32) -> (i32, i32) {
    %c0_i32 = arith.constant 0 : i32
    %c0_i32_0 = arith.constant 0 : i32
    return %arg0, %c0_i32 : i32, i32
  }
  func.func @transform_5(%arg0: i32) -> (i32, i32) {
    %c0_i32 = arith.constant 0 : i32
    %c0_i32_0 = arith.constant 0 : i32
    %c0_i32_1 = arith.constant 0 : i32
    return %c0_i32, %c0_i32_0 : i32, i32
  }
  func.func @transform_6(%arg0: i32) -> (i32, i32) {
    %c0_i32 = arith.constant 0 : i32
    %c0_i32_0 = arith.constant 0 : i32
    %c0_i32_1 = arith.constant 0 : i32
    return %c0_i32, %c0_i32_0 : i32, i32
  }
  func.func @transform_7(%arg0: i32) -> (i32, i32) {
    %c0_i32 = arith.constant 0 : i32
    %c0_i32_0 = arith.constant 0 : i32
    %c0_i32_1 = arith.constant 0 : i32
    return %c0_i32, %c0_i32_0 : i32, i32
  }
  func.func @transform_8(%arg0: i32) -> (i32, i32) {
    %c0_i32 = arith.constant 0 : i32
    %c0_i32_0 = arith.constant 0 : i32
    return %arg0, %c0_i32 : i32, i32
  }
  func.func @transform_9(%arg0: i32) -> (i32, i32) {
    %c0_i32 = arith.constant 0 : i32
    %c0_i32_0 = arith.constant 0 : i32
    return %arg0, %c0_i32 : i32, i32
  }
}

</mosaic_0001>

<bundles_post_ra>
// kernel: _ntm_write_head_jit.1
= control target key start
LH: loop header
LB: loop body
LE: loop exit
PB: predicated region body
PF: predicated region fallthrough
CT: control target
= control target key end

     0   :  { %15 = vsyncpa [#allocation3], 0  ;;  %s5928_s0 = inlined_call_operand.vmem [shape: f32[2,32], index: 0, kind: input, shape index: {}]   ;;  %s5929_s1 = inlined_call_operand.vmem [shape: f32[32,128], index: 1, kind: input, shape index: {}]   ;;  %s5930_s2 = inlined_call_operand.vmem [shape: f32[1,128], index: 2, kind: input, shape index: {}]   ;;  %s5931_s3 = inlined_call_operand.vmem [shape: f32[2,16], index: 3, kind: input, shape index: {}]   ;;  %s5932_s4 = inlined_call_operand.hbm [shape: f32[2,128], index: 4, kind: input, shape index: {}, may-alias: {4,9}]   ;;  %s5933_s5 = inlined_call_operand.vmem [shape: f32[128,16], index: 5, kind: input, shape index: {}]   ;;  %s5934_s6 = inlined_call_operand.vmem [shape: f32[16,128], index: 6, kind: input, shape index: {}]   ;;  %s5935_s7 = inlined_call_operand.vmem [shape: f32[8,128], index: 7, kind: input, shape index: {}]   ;;  %s5936_s8 = inlined_call_operand.hbm [shape: f32[2,16], index: 8, kind: output, shape index: {0}]   ;;  %s5937_s9 = inlined_call_operand.hbm [shape: f32[2,128], index: 9, kind: output, shape index: {1}, may-alias: {4,9}]  }
   0x1   :  { %16 = vsyncpa [#allocation4], 0 }
   0x2   :  { %17 = vsyncpa [#allocation7], 0  ;;  %s4910_s30 = smov [#allocation2]  }
   0x3   :  { %s32_s10 = sshll.u32 %s4910_s30, 4  ;;  %s33_s10 = int_to_ptr.vmem [resolvable:$true] %s32_s10 }
   0x4   :  { %s4852_s11 = scalar_lea.vmem %s33_s10, 32  ;;  %p4857_p1 = scmp.lt.s32.totalorder %s33_s10, %s33_s10 }
   0x5   :  { %p4853_p0 = scmp.ne.s32.totalorder %s33_s10, %s4852_s11  ;;  %p4858_p2 = scmp.lt.s32.totalorder %s4852_s11, %s4852_s11 }
   0x7   :  { %p4859_p3 = por %p4858_p2, %p4857_p1 }
   0x9   :  { %p4860_p4 = pnand %p4859_p3, %p4853_p0 }
   0xb   :  { %4863 = shalt.err (!%p4860_p4)
}
   0xc   :  { %35 = dma.hbm_to_vmem [thread:$0]  %s5932_s4, 32, %s33_s10, [#allocation3]  }
   0xd   :  { %4904 = dma.done.wait [#allocation3], 32  }
   0xe   :  { %4905 = vsyncadd [#allocation3], 4294967264  ;;  %v5971_v0 = vmov 0.0   ;;  %vm5975_vm0 = vmmov 0   ;;  %vm57_vm1 = vcmask 261120   ;;  %v49_v1 = vld [vmem:[%s5929_s1 + $0x18] sm:$0xff] }
   0xf   :  { %4122 = vmatprep.subr.mxu0 %v5971_v0  ;;  %4133 = vmatprep.subr.mxu1 %v5971_v0  ;;  %v48_v2 = vld [vmem:[%s5929_s1 + $0x10] sm:$0xff]  ;;  %v47_v3 = vld [vmem:[%s5929_s1 + $0x8] sm:$0xff]  ;;  %v4998_v4 = vand.u32 4294901760, %v49_v1  ;;  %v46_v7 = vld [vmem:[%s5929_s1] sm:$0xff]  ;;  %v4913_v38 = vmov 8   ;;  %vm570_vm2 = vcmask 99408  }
  0x10   :  { %4130 = vmatprep.mubr.msk.f32.mxu0 %vm5975_vm0, %v5971_v0  ;;  %4141 = vmatprep.mubr.msk.f32.mxu1 %vm5975_vm0, %v5971_v0  ;;  %v5000_v5 = vand.u32 4294901760, %v48_v2  ;;  %v5002_v6 = vand.u32 4294901760, %v47_v3  ;;  %v45_v8 = vld [vmem:[%s5928_s0] sm:$0x3]  ;;  %v5010_v9 = vand.u32 4294901760, %v46_v7  ;;  %vm5977_vm3 = vcmask 64512  }
  0x11   :  { %v59_v10 = vsel %vm57_vm1, %v45_v8, 0  ;;  %4123 = vmatpush3.msra.mxu0 %v4998_v4  ;;  %v166_v11 = vsub.f32 %v49_v1, %v4998_v4  ;;  %v606_v32 = vld [vmem:[%s5935_s7] sm:$0xff]  ;;  %4812 = vset.pattern.permute.xlu0 %v4913_v38  ;;  %vm2345_vm4 = vcmask 58368   ;;  %vm2359_vm7 = vcmask 123904   ;;  %s4919_s29 = smov 114   ;;  %s4921_s30 = smov 106  }
  0x12   :  { %v5014_v12 = vand.u32 4294901760, %v59_v10  ;;  %v173_v13 = vsub.f32 %v48_v2, %v5000_v5  ;;  %v180_v14 = vsub.f32 %v47_v3, %v5002_v6  ;;  %4124 = vmatprep.subr.mxu0 %v5971_v0  ;;  %v187_v15 = vsub.f32 %v46_v7, %v5010_v9  ;;  %v3832_v42 = vld [vmem:[%s5930_s2] ss:$0 sm:$0xff]  ;;  %s4922_s12 = smov 113   ;;  %s4923_s13 = smov 1  }
  0x13   :  { %4125 = vmatpush3.msra.mxu0 %v5000_v5  ;;  %v167_v16 = vand.u32 4294901760, %v166_v11  ;;  %v5073_v33 = vand.u32 4294901760, %v606_v32  ;;  %vm581_vm8 = vcmask 17408   ;;  %s4924_s14 = smov 127   ;;  %s4925_s15 = smov 15   ;;  %vm2393_vm9 = vcmask 7168  }
  0x14   :  { %v131_v17 = vsub.f32 %v59_v10, %v5014_v12  ;;  %v174_v18 = vand.u32 4294901760, %v173_v13  ;;  %v181_v19 = vand.u32 4294901760, %v180_v14  ;;  %4126 = vmatprep.subr.mxu0 %v5971_v0  ;;  %v188_v20 = vand.u32 4294901760, %v187_v15 }
  0x15   :  { %4127 = vmatpush3.msra.mxu0 %v5002_v6  ;;  %v168_v21 = vsub.f32 %v166_v11, %v167_v16  ;;  %5978 = vst [vmem:[#allocation11_spill] sm:$0xff] %v5073_v33  ;;  %v5076_v34 = vsub.f32 %v606_v32, %v5073_v33  ;;  %vm2401_vm10 = vcmask 121856  }
  0x16   :  { %v132_v22 = vand.u32 4294901760, %v131_v17  ;;  %v175_v23 = vsub.f32 %v173_v13, %v174_v18  ;;  %v182_v24 = vsub.f32 %v180_v14, %v181_v19  ;;  %4128 = vmatprep.subr.mxu0 %v5971_v0  ;;  %v189_v28 = vsub.f32 %v187_v15, %v188_v20 }
  0x17   :  { %4129 = vmatpush3.msra.mxu0 %v5010_v9  ;;  %v169_v25 = vand.u32 4294901760, %v168_v21  ;;  %5979 = vst [vmem:[#allocation12_spill] sm:$0xff] %v5076_v34  ;;  %v5081_v35 = vand.u32 4294901760, %v5076_v34 }
  0x18   :  { %v133_v26 = vsub.f32 %v131_v17, %v132_v22  ;;  %v176_v27 = vand.u32 4294901760, %v175_v23  ;;  %4144 = vmatprep.subr.mxu0 %v5971_v0  ;;  %v183_v30 = vand.u32 4294901760, %v182_v24  ;;  %v190_v31 = vand.u32 4294901760, %v189_v28  ;;  %v600_v24 = vld [vmem:[%s5933_s5 + $0x60] sm:$0xff] }
  0x19   :  { %4134 = vmatpush3.msra.mxu1 %v169_v25  ;;  %5980 = vst [vmem:[#allocation13_spill] sm:$0xff] %v5081_v35  ;;  %v724_v36 = vsub.f32 %v5076_v34, %v5081_v35 }
  0x1a   :  { %v134_v29 = vand.u32 4294901760, %v133_v26  ;;  %4135 = vmatprep.subr.mxu1 %v5971_v0  ;;  %v5137_v26 = vand.u32 4294901760, %v600_v24 }
  0x1b   :  { %4136 = vmatpush3.msra.mxu1 %v176_v27  ;;  %v5085_v37 = vand.u32 4294901760, %v724_v36 }
  0x1c   :  { %4131 = vmatmul.mubr.f32.vlgmr.msra.gmra.mxu0 %v134_v29  ;;  %4137 = vmatprep.subr.mxu1 %v5971_v0 }
  0x1d   :  { %4145 = vmatpush3.msra.mxu0 %v166_v11  ;;  %4138 = vmatpush3.msra.mxu1 %v183_v30  ;;  %5981 = vst [vmem:[#allocation14_spill] sm:$0xff] %v5085_v37 }
  0x1e   :  { %4146 = vmatprep.subr.mxu0 %v5971_v0  ;;  %4139 = vmatprep.subr.mxu1 %v5971_v0 }
  0x1f   :  { %4147 = vmatpush3.msra.mxu0 %v173_v13  ;;  %4140 = vmatpush3.msra.mxu1 %v190_v31  ;;  %v5155_v31 = vsub.f32 %v600_v24, %v5137_v26 }
  0x20   :  { %4148 = vmatprep.subr.mxu0 %v5971_v0  ;;  %4142 = vmatmul.mubr.f32.vlgmr.msra.gmra.mxu1 %v5014_v12 }
  0x21   :  { %4149 = vmatpush3.msra.mxu0 %v180_v14  ;;  %4155 = vmatprep.subr.mxu1 %v5971_v0 }
  0x22   :  { %4150 = vmatprep.subr.mxu0 %v5971_v0  ;;  %4156 = vmatpush3.msra.mxu1 %v4998_v4 }
  0x23   :  { %4151 = vmatpush3.msra.mxu0 %v187_v15  ;;  %4152 = vmatprep.mubr.msk.f32.mxu0 %vm5975_vm0, %v5971_v0 }
  0x24   :  { %4157 = vmatprep.subr.mxu1 %v5971_v0  ;;  %4166 = vmatprep.subr.mxu0 %v5971_v0 }
  0x25   :  { %4153 = vmatmul.mubr.f32.vlgmr.msra.gmra.mxu0 %v131_v17  ;;  %4158 = vmatpush3.msra.mxu1 %v5000_v5  ;;  %v603_v17 = vld [vmem:[%s5933_s5 + $0x78] sm:$0xff] }
  0x26   :  { %4167 = vmatpush3.msra.mxu0 %v167_v16  ;;  %4159 = vmatprep.subr.mxu1 %v5971_v0  ;;  %v5128_v21 = vand.u32 4294901760, %v603_v17 }
  0x27   :  { %4168 = vmatprep.subr.mxu0 %v5971_v0  ;;  %4160 = vmatpush3.msra.mxu1 %v5002_v6 }
  0x28   :  { %4169 = vmatpush3.msra.mxu0 %v174_v18  ;;  %4161 = vmatprep.subr.mxu1 %v5971_v0  ;;  %v602_v18 = vld [vmem:[%s5933_s5 + $0x70] sm:$0xff]  ;;  %v5142_v27 = vsub.f32 %v603_v17, %v5128_v21 }
  0x29   :  { %4170 = vmatprep.subr.mxu0 %v5971_v0  ;;  %4162 = vmatpush3.msra.mxu1 %v5010_v9 }
  0x2a   :  { %4163 = vmatprep.mubr.msk.f32.mxu1 %vm5975_vm0, %v5971_v0  ;;  %4171 = vmatpush3.msra.mxu0 %v181_v19  ;;  %v601_v19 = vld [vmem:[%s5933_s5 + $0x68] sm:$0xff]  ;;  %v5160_v32 = vand.u32 4294901760, %v5142_v27 }
  0x2b   :  { %4164 = vmatmul.mubr.f32.vlgmr.msra.gmra.mxu1 %v132_v22  ;;  %4172 = vmatprep.subr.mxu0 %v5971_v0  ;;  %v5130_v22 = vand.u32 4294901760, %v602_v18  ;;  %v5132_v23 = vand.u32 4294901760, %v601_v19 }
  0x2c   :  { %4177 = vmatprep.subr.mxu1 %v5971_v0  ;;  %4173 = vmatpush3.msra.mxu0 %v188_v20 }
  0x2d   :  { %4174 = vmatprep.mubr.msk.f32.mxu0 %vm5975_vm0, %v5971_v0  ;;  %4178 = vmatpush3.msra.mxu1 %v4998_v4  ;;  %v5145_v28 = vsub.f32 %v602_v18, %v5130_v22  ;;  %v5148_v29 = vsub.f32 %v601_v19, %v5132_v23  ;;  %v592_v18 = vld [vmem:[%s5933_s5 + $0x20] sm:$0xff] }
  0x2e   :  { %4175 = vmatmul.mubr.f32.vlgmr.msra.gmra.mxu0 %v5014_v12  ;;  %4179 = vmatprep.subr.mxu1 %v5971_v0 }
  0x2f   :  { %4185 = vmatprep.mubr.msk.f32.mxu1 %vm5975_vm0, %v5971_v0  ;;  %4180 = vmatpush3.msra.mxu1 %v5000_v5  ;;  %v5163_v36 = vand.u32 4294901760, %v5145_v28  ;;  %v5166_v38 = vand.u32 4294901760, %v5148_v29 }
  0x30   :  { %4188 = vmatprep.subr.mxu0 %v5971_v0  ;;  %4181 = vmatprep.subr.mxu1 %v5971_v0 }
  0x31   :  { %4190 = vmatprep.mubr.msk.f32.mxu0 %vm5975_vm0, %v5971_v0  ;;  %4182 = vmatpush3.msra.mxu1 %v5002_v6 }
  0x32   :  { %4183 = vmatprep.subr.mxu1 %v5971_v0  ;;  %4189 = vmatpush3.msra.mxu0 %v5073_v33 }
  0x33   :  { %4184 = vmatpush3.msra.mxu1 %v5010_v9  ;;  %4198 = vmatprep.subr.mxu0 %v5971_v0 }
  0x34   :  { %4186 = vmatmul.mubr.f32.vlgmr.msra.gmra.mxu1 %v5014_v12  ;;  %4193 = vmatprep.subr.mxu1 %v5971_v0 }
  0x35   :  { %4195 = vmatprep.mubr.msk.f32.mxu1 %vm5975_vm0, %v5971_v0  ;;  %4194 = vmatpush3.msra.mxu1 %v5085_v37 }
  0x36   :  { %4203 = vmatprep.subr.mxu1 %v5971_v0 }
  0xdc   :  { %v136_v39 = vpop.f32.mrf.mxu0 }
  0xdd   :  { %v137_v45 = vadd.f32 %v3832_v42, %v136_v39  ;;  %v5170_v39 = vand.u32 4294901760, %v5155_v31  ;;  %v1170_v42 = vsub.f32 %v5148_v29, %v5166_v38 }
  0xde   :  { %v4132_v40 = vpop.f32.mrf.mxu0 }
  0xdf   :  { %v1156_v40 = vsub.f32 %v5142_v27, %v5160_v32 }
  0xe0   :  { %v227_v41 = vpop.f32.mrf.mxu1 }
  0xe1   :  { %v228_v47 = vadd.f32 %v227_v41, %v137_v45  ;;  %v1163_v41 = vsub.f32 %v5145_v28, %v5163_v36  ;;  %v1177_v45 = vsub.f32 %v5155_v31, %v5170_v39 }
  0xe2   :  { %v4143_v43 = vpop.f32.mrf.mxu1 }
  0xe3   :  { %v5181_v43 = vand.u32 4294901760, %v1156_v40 }
  0xe5   :  { %v307_v44 = vpop.f32.mrf.mxu0  ;;  %5984 = vst [vmem:[#allocation17_spill] sm:$0xff] %v5181_v43 }
  0xe6   :  { %v308_v50 = vadd.f32 %v307_v44, %v228_v47  ;;  %v5183_v44 = vand.u32 4294901760, %v1163_v41  ;;  %v5194_v47 = vand.u32 4294901760, %v1177_v45  ;;  %v591_v41 = vld [vmem:[%s5933_s5 + $0x18] sm:$0xff] }
  0xe7   :  { %v4154_v46 = vpop.f32.mrf.mxu0 }
  0xe8   :  { %5985 = vst [vmem:[#allocation18_spill] sm:$0xff] %v5183_v44  ;;  %v5190_v46 = vand.u32 4294901760, %v1170_v42  ;;  %5987 = vst [vmem:[#allocation20_spill] sm:$0xff] %v5194_v47 }
  0xea   :  { %5986 = vst [vmem:[#allocation19_spill] sm:$0xff] %v5190_v46 }
  0xeb   :  { %v384_v48 = vpop.f32.mrf.mxu1 }
  0xec   :  { %v385_v52 = vadd.f32 %v384_v48, %v308_v50  ;;  %v599_v48 = vld [vmem:[%s5933_s5 + $0x58] sm:$0xff]  ;;  %v598_v50 = vld [vmem:[%s5933_s5 + $0x50] sm:$0xff] }
  0xed   :  { %v4165_v49 = vpop.f32.mrf.mxu1 }
  0xee   :  { %v467_v51 = vpop.f32.mrf.mxu0  ;;  %v5204_v49 = vand.u32 4294901760, %v599_v48 }
  0xef   :  { %v468_v54 = vadd.f32 %v467_v51, %v385_v52  ;;  %v5212_v52 = vand.u32 4294901760, %v598_v50 }
  0xf0   :  { %v4176_v53 = vpop.f32.mrf.mxu0  ;;  %v5210_v51 = vsub.f32 %v599_v48, %v5204_v49 }
  0xf1   :  { %v597_v53 = vld [vmem:[%s5933_s5 + $0x48] sm:$0xff] }
  0xf4   :  { %v542_v55 = vpop.f32.mrf.mxu1 }
  0xf5   :  { %v5092_v56 = vadd.f32 %v542_v55, %v468_v54  ;;  %v5220_v54 = vand.u32 4294901760, %v5210_v51  ;;  %v5223_v55 = vsub.f32 %v598_v50, %v5212_v52  ;;  %v5329_v50 = vand.u32 4294901760, %v591_v41 }
  0xf6   :  { %v4187_v57 = vpop.f32.mrf.mxu1 }
  0xf7   :  { %5982 = vst [vmem:[#allocation15_spill] sm:$0xff] %v5092_v56  ;;  %v549_v58 = vand.u32 2147483647, %v5092_v56  ;;  %v571_v59 = vsel %vm570_vm2, %v5092_v56, -inf  ;;  %v609_v60 = vadd.f32 1e-16, %v5092_v56  ;;  %vm547_vm6 = vcmp.ne.f32.partialorder %v5092_v56, %v5092_v56 }
  0xf8   :  { %572 = vmax.xlane.f32.xlu1 %v571_v59  ;;  %v546_v16 = vmax.f32 %v5092_v56, 0.0  ;;  %v5225_v57 = vand.u32 4294901760, %v597_v53  ;;  %v1184_v59 = vsub.f32 %v5210_v51, %v5220_v54 }
  0xf9   :  { %v550_v61 = vsub.f32 0.0, %v549_v58  ;;  %v2344_v62 = vmul.f32 %v609_v60, %v609_v60  ;;  %v612_v63 = vsel %vm5977_vm3, %v609_v60, 0  ;;  %v596_v58 = vld [vmem:[%s5933_s5 + $0x40] sm:$0xff]  ;;  %v5235_v60 = vand.u32 4294901760, %v5223_v55 }
  0xfa   :  { %v680_v1 = vand.u32 4294901760, %v612_v63 }
  0xfb   :  { %v551_v2 = vmul.f32 1.442695, %v550_v61  ;;  %v2346_v3 = vsel %vm2345_vm4, %v2344_v62, 0.0  ;;  %v5238_v61 = vsub.f32 %v597_v53, %v5225_v57  ;;  %v5240_v62 = vand.u32 4294901760, %v596_v58 }
  0xfc   :  { %2347 = vadd.xlane.f32.xlu0 %v2346_v3  ;;  %v681_v4 = vsub.f32 %v612_v63, %v680_v1  ;;  %4196 = vmatmul.mubr.f32.vlgmr.msra.gmra.mxu1 %v680_v1  ;;  %v595_v63 = vld [vmem:[%s5933_s5 + $0x38] sm:$0xff] }
  0xfd   :  { %4819 = vpow2.f32 %v551_v2  ;;  %4204 = vmatpush3.msra.mxu1 %v5073_v33  ;;  %4205 = vmatprep.mubr.msk.f32.mxu1 %vm5975_vm0, %v5971_v0  ;;  %v1191_v2 = vsub.f32 %v5223_v55, %v5235_v60  ;;  %v5252_v3 = vand.u32 4294901760, %v5238_v61 }
  0xfe   :  { %v682_v5 = vand.u32 4294901760, %v681_v4  ;;  %4213 = vmatprep.subr.mxu1 %v5971_v0 }
 0x100   :  { %4206 = vmatmul.mubr.f32.vlgmr.msra.gmra.mxu1 %v682_v5  ;;  %v683_v6 = vsub.f32 %v681_v4, %v682_v5  ;;  %v5258_v5 = vand.u32 4294901760, %v595_v63 }
 0x101   :  { %4214 = vmatpush3.msra.mxu1 %v5073_v33  ;;  %4215 = vmatprep.mubr.msk.f32.mxu1 %vm5975_vm0, %v5971_v0 }
 0x102   :  { %v684_v7 = vand.u32 4294901760, %v683_v6  ;;  %4253 = vmatprep.subr.mxu1 %v5971_v0  ;;  %v594_v6 = vld [vmem:[%s5933_s5 + $0x30] sm:$0xff] }
 0x104   :  { %4191 = vmatmul.mubr.f32.vlgmr.msra.gmra.mxu0 %v684_v7  ;;  %4216 = vmatmul.mubr.f32.vlgmr.msra.gmra.mxu1 %v680_v1  ;;  %v5265_v7 = vand.u32 4294901760, %v1191_v2 }
 0x105   :  { %4199 = vmatpush3.msra.mxu0 %v5076_v34  ;;  %4200 = vmatprep.mubr.msk.f32.mxu0 %vm5975_vm0, %v5971_v0 }
 0x106   :  { %4208 = vmatprep.subr.mxu0 %v5971_v0  ;;  %4285 = vmatprep.mubr.msk.f32.mxu1 %vm5975_vm0, %v5971_v0  ;;  %5989 = vst [vmem:[#allocation22_spill] sm:$0xff] %v5265_v7 }
 0x107   :  { %4254 = vmatpush3.msra.mxu1 %v5181_v43 }
 0x108   :  { %4201 = vmatmul.mubr.f32.vlgmr.msra.gmra.mxu0 %v681_v4  ;;  %4255 = vmatprep.subr.mxu1 %v5971_v0  ;;  %v5255_v4 = vsub.f32 %v596_v58, %v5240_v62  ;;  %v590_v58 = vld [vmem:[%s5933_s5 + $0x10] sm:$0xff] }
 0x109   :  { %4209 = vmatpush3.msra.mxu0 %v5081_v35  ;;  %4210 = vmatprep.mubr.msk.f32.mxu0 %vm5975_vm0, %v5971_v0 }
 0x10a   :  { %v4820_v8 = vpop.eup %4819  ;;  %4218 = vmatprep.subr.mxu0 %v5971_v0  ;;  %4256 = vmatpush3.msra.mxu1 %v5183_v44  ;;  %v607_v44 = vld [vmem:[#allocation2] sm:$0x3] }
 0x10b   :  { %v553_v9 = vadd.f32 1.0, %v4820_v8  ;;  %v556_v10 = vmul.f32 -0.5, %v4820_v8  ;;  %v559_v12 = vand.u32 2147483647, %v4820_v8  ;;  %4257 = vmatprep.subr.mxu1 %v5971_v0  ;;  %v5429_v43 = vadd.f32 1e-16, %v607_v44 }
 0x10c   :  { %4211 = vmatmul.mubr.f32.vlgmr.msra.gmra.mxu0 %v680_v1  ;;  %4258 = vmatpush3.msra.mxu1 %v5190_v46  ;;  %v5247_v1 = vand.u32 4294901760, %v1184_v59 }
 0x10d   :  { %4821 = vlog2.f32 %v553_v9  ;;  %4250 = vmatprep.mubr.msk.f32.mxu0 %vm5975_vm0, %v5971_v0  ;;  %v557_v11 = vadd.f32 1.0, %v556_v10  ;;  %vm560_vm5 = vcmp.lt.f32.partialorder %v559_v12, 0.0004427343  ;;  %4219 = vmatpush3.msra.mxu0 %v5128_v21  ;;  %v5270_v9 = vand.u32 4294901760, %v5255_v4  ;;  %v593_v12 = vld [vmem:[%s5933_s5 + $0x28] sm:$0xff] }
 0x10e   :  { %4220 = vmatprep.subr.mxu0 %v5971_v0  ;;  %4259 = vmatprep.subr.mxu1 %v5971_v0  ;;  %5988 = vst [vmem:[#allocation21_spill] sm:$0xff] %v5247_v1  ;;  %v5272_v10 = vand.u32 4294901760, %v594_v6 }
 0x10f   :  { %v558_v15 = vmul.f32 %v4820_v8, %v557_v11  ;;  %4221 = vmatpush3.msra.mxu0 %v5130_v22  ;;  %4260 = vmatpush3.msra.mxu1 %v5194_v47  ;;  %v1198_v8 = vsub.f32 %v5238_v61, %v5252_v3  ;;  %v5276_v11 = vsub.f32 %v595_v63, %v5258_v5 }
 0x110   :  { %4222 = vmatprep.subr.mxu0 %v5971_v0  ;;  %4261 = vmatprep.subr.mxu1 %v5971_v0 }
 0x111   :  { %4223 = vmatpush3.msra.mxu0 %v5132_v23  ;;  %4262 = vmatpush3.msra.mxu1 %v5247_v1  ;;  %v5295_v17 = vand.u32 4294901760, %v5276_v11 }
 0x112   :  { %4224 = vmatprep.subr.mxu0 %v5971_v0  ;;  %4263 = vmatprep.subr.mxu1 %v5971_v0 }
 0x113   :  { %4225 = vmatpush3.msra.mxu0 %v5137_v26  ;;  %4264 = vmatpush3.msra.mxu1 %v5265_v7  ;;  %v1212_v40 = vsub.f32 %v5276_v11, %v5295_v17 }
 0x114   :  { %4226 = vmatprep.subr.mxu0 %v5971_v0  ;;  %4265 = vmatprep.subr.mxu1 %v5971_v0 }
 0x115   :  { %4227 = vmatpush3.msra.mxu0 %v5204_v49  ;;  %v5333_v53 = vand.u32 4294901760, %v1212_v40 }
 0x116   :  { %4228 = vmatprep.subr.mxu0 %v5971_v0 }
 0x117   :  { %4229 = vmatpush3.msra.mxu0 %v5212_v52  ;;  %5992 = vst [vmem:[#allocation25_spill] sm:$0xff] %v5333_v53 }
 0x118   :  { %4230 = vmatprep.subr.mxu0 %v5971_v0 }
 0x119   :  { %4231 = vmatpush3.msra.mxu0 %v5225_v57 }
 0x11a   :  { %v4822_v13 = vpop.eup %4821  ;;  %4232 = vmatprep.subr.mxu0 %v5971_v0 }
 0x11b   :  { %v555_v14 = vmul.f32 0.6931472, %v4822_v13  ;;  %4233 = vmatpush3.msra.mxu0 %v5240_v62  ;;  %v5283_v13 = vand.u32 4294901760, %v1198_v8  ;;  %v5351_v8 = vand.u32 4294901760, %v590_v58 }
 0x11c   :  { %4234 = vmatprep.subr.mxu0 %v5971_v0 }
 0x11d   :  { %v561_v20 = vsel %vm560_vm5, %v558_v15, %v555_v14  ;;  %4235 = vmatpush3.msra.mxu0 %v5258_v5  ;;  %5990 = vst [vmem:[#allocation23_spill] sm:$0xff] %v5283_v13  ;;  %v1205_v14 = vsub.f32 %v5255_v4, %v5270_v9  ;;  %v5288_v15 = vsub.f32 %v594_v6, %v5272_v10 }
 0x11e   :  { %v562_v25 = vadd.f32 %v561_v20, %v546_v16  ;;  %v5290_v16 = vand.u32 4294901760, %v593_v12  ;;  %4236 = vmatprep.subr.mxu0 %v5971_v0  ;;  %4266 = vmatpush3.msra.mxu1 %v5283_v13  ;;  %v5347_v6 = vsub.f32 %v591_v41, %v5329_v50 }
 0x11f   :  { %4237 = vmatpush3.msra.mxu0 %v5272_v10  ;;  %v5302_v19 = vand.u32 4294901760, %v1205_v14  ;;  %v5305_v20 = vand.u32 4294901760, %v5288_v15  ;;  %4267 = vmatprep.subr.mxu1 %v5971_v0 }
 0x120   :  { %v5152_v30 = vsel %vm547_vm6, %v5092_v56, %v562_v25  ;;  %v5308_v24 = vsub.f32 %v593_v12, %v5290_v16  ;;  %v5310_v25 = vand.u32 4294901760, %v592_v18  ;;  %4238 = vmatprep.subr.mxu0 %v5971_v0  ;;  %v589_v12 = vld [vmem:[%s5933_s5 + $0x8] sm:$0xff]  ;;  %v5363_v40 = vand.u32 4294901760, %v5347_v6 }
 0x121   :  { %5983 = vst [vmem:[#allocation16_spill] sm:$0xff] %v5152_v30  ;;  %2355 = vperm.xlu0 %4812, %v5152_v30   ;;  %5991 = vst [vmem:[#allocation24_spill] sm:$0xff] %v5302_v19  ;;  %4239 = vmatpush3.msra.mxu0 %v5290_v16  ;;  %v1219_v42 = vsub.f32 %v5288_v15, %v5305_v20  ;;  %v5365_v41 = vand.u32 4294901760, %v589_v12 }
 0x122   :  { %4268 = vmatpush3.msra.mxu1 %v5302_v19  ;;  %v5324_v45 = vand.u32 4294901760, %v5308_v24  ;;  %v5327_v48 = vsub.f32 %v592_v18, %v5310_v25  ;;  %4240 = vmatprep.subr.mxu0 %v5971_v0  ;;  %5995 = vst [vmem:[#allocation28_spill] sm:$0xff] %v5363_v40  ;;  %v1240_v34 = vsub.f32 %v5347_v6, %v5363_v40 }
 0x123   :  { %4269 = vmatprep.subr.mxu1 %v5971_v0  ;;  %4241 = vmatpush3.msra.mxu0 %v5310_v25  ;;  %v5339_v59 = vand.u32 4294901760, %v1219_v42  ;;  %v5370_v42 = vsub.f32 %v590_v58, %v5351_v8  ;;  %v5382_v33 = vsub.f32 %v589_v12, %v5365_v41 }
 0x124   :  { %v1226_v63 = vsub.f32 %v5308_v24, %v5324_v45  ;;  %v5344_v2 = vand.u32 4294901760, %v5327_v48  ;;  %4242 = vmatprep.subr.mxu0 %v5971_v0  ;;  %4270 = vmatpush3.msra.mxu1 %v5333_v53 }
 0x125   :  { %5993 = vst [vmem:[#allocation26_spill] sm:$0xff] %v5339_v59  ;;  %4243 = vmatpush3.msra.mxu0 %v5329_v50  ;;  %4271 = vmatprep.subr.mxu1 %v5971_v0  ;;  %v5389_v58 = vand.u32 4294901760, %v5370_v42  ;;  %v5396_v30 = vand.u32 4294901760, %v5382_v33 }
 0x126   :  { %v5358_v14 = vand.u32 4294901760, %v1226_v63  ;;  %v1233_v18 = vsub.f32 %v5327_v48, %v5344_v2  ;;  %4244 = vmatprep.subr.mxu0 %v5971_v0  ;;  %4272 = vmatpush3.msra.mxu1 %v5339_v59  ;;  %v588_v63 = vld [vmem:[%s5933_s5] sm:$0xff]  ;;  %s4914_s5 = smov 118  }
 0x127   :  { %4245 = vmatpush3.msra.mxu0 %v5351_v8  ;;  %4273 = vmatprep.subr.mxu1 %v5971_v0  ;;  %v5384_v37 = vand.u32 4294901760, %v588_v63  ;;  %5997 = vst [vmem:[#allocation30_spill] sm:$0xff] %v5389_v58  ;;  %5999 = vst [vmem:[#allocation32_spill] sm:$0xff] %v5396_v30  ;;  %v1247_v56 = vsub.f32 %v5370_v42, %v5389_v58 }
 0x128   :  { %5994 = vst [vmem:[#allocation27_spill] sm:$0xff] %v5358_v14  ;;  %v5377_v35 = vand.u32 4294901760, %v1233_v18  ;;  %4246 = vmatprep.subr.mxu0 %v5971_v0  ;;  %4274 = vmatpush3.msra.mxu1 %v5358_v14  ;;  %v5393_v18 = vand.u32 4294901760, %v1240_v34  ;;  %v1254_v34 = vsub.f32 %v5382_v33, %v5396_v30 }
 0x129   :  { %4247 = vmatpush3.msra.mxu0 %v5365_v41  ;;  %4275 = vmatprep.subr.mxu1 %v5971_v0  ;;  %v5399_v12 = vsub.f32 %v588_v63, %v5384_v37  ;;  %v5414_v63 = vand.u32 4294901760, %v1247_v56  ;;  %v6005_v44 = vld [vmem:[#allocation28_spill] sm:$0xff] }
 0x12a   :  { %5996 = vst [vmem:[#allocation29_spill] sm:$0xff] %v5377_v35  ;;  %5998 = vst [vmem:[#allocation31_spill] sm:$0xff] %v5393_v18  ;;  %4248 = vmatprep.subr.mxu0 %v5971_v0  ;;  %4276 = vmatpush3.msra.mxu1 %v5377_v35  ;;  %v5417_v35 = vand.u32 4294901760, %v1254_v34 }
 0x12b   :  { %4249 = vmatpush3.msra.mxu0 %v5384_v37  ;;  %4277 = vmatprep.subr.mxu1 %v5971_v0  ;;  %v5410_v14 = vand.u32 4294901760, %v5399_v12  ;;  %6001 = vst [vmem:[#allocation34_spill] sm:$0xff] %v5414_v63 }
 0x12c   :  { %4288 = vmatprep.subr.mxu0 %v5971_v0  ;;  %4278 = vmatpush3.msra.mxu1 %v5393_v18  ;;  %6002 = vst [vmem:[#allocation35_spill] sm:$0xff] %v5417_v35 }
 0x12d   :  { %6000 = vst [vmem:[#allocation33_spill] sm:$0xff] %v5410_v14  ;;  %4279 = vmatprep.subr.mxu1 %v5971_v0  ;;  %v1261_v59 = vsub.f32 %v5399_v12, %v5410_v14 }
 0x12e   :  { %4280 = vmatpush3.msra.mxu1 %v5414_v63 }
 0x12f   :  { %4281 = vmatprep.subr.mxu1 %v5971_v0  ;;  %v5423_v53 = vand.u32 4294901760, %v1261_v59 }
 0x130   :  { %4282 = vmatpush3.msra.mxu1 %v5417_v35 }
 0x131   :  { %6003 = vst [vmem:[#allocation36_spill] sm:$0xff] %v5423_v53  ;;  %4283 = vmatprep.subr.mxu1 %v5971_v0 }
 0x132   :  { %4284 = vmatpush3.msra.mxu1 %v5423_v53 }
 0x133   :  { %4323 = vmatprep.subr.mxu1 %v5971_v0 }
 0x1bc   :  { %v762_v56 = vpop.f32.mrf.mxu1 }
 0x1be   :  { %v4197_v34 = vpop.f32.mrf.mxu1 }
 0x1c0   :  { %v910_v18 = vpop.f32.mrf.mxu1 }
 0x1c2   :  { %v4207_v19 = vpop.f32.mrf.mxu1 }
 0x1c4   :  { %v686_v13 = vpop.f32.mrf.mxu0  ;;  %v1056_v7 = vpop.f32.mrf.mxu1 }
 0x1c5   :  { %v763_v47 = vadd.f32 %v762_v56, %v686_v13  ;;  %v6009_v13 = vld [vmem:[#allocation18_spill] sm:$0xff]  ;;  %v6015_v56 = vld [vmem:[#allocation23_spill] sm:$0xff] }
 0x1c6   :  { %v4192_v1 = vpop.f32.mrf.mxu0  ;;  %v4217_v63 = vpop.f32.mrf.mxu1 }
 0x1c7   :  { %v6007_v1 = vld [vmem:[#allocation17_spill] sm:$0xff]  ;;  %v1702_v63 = vmul.f32 %v5429_v43, %v5429_v43 }
 0x1c8   :  { %v836_v46 = vpop.f32.mrf.mxu0 }
 0x1c9   :  { %v837_v59 = vadd.f32 %v836_v46, %v763_v47  ;;  %v6004_v46 = vmov 0.0   ;;  %v6006_v47 = vld [vmem:[#allocation30_spill] sm:$0xff] }
 0x1ca   :  { %v4202_v14 = vpop.f32.mrf.mxu0 }
 0x1cb   :  { %v911_v35 = vadd.f32 %v910_v18, %v837_v59  ;;  %v6011_v14 = vld [vmem:[#allocation19_spill] sm:$0xff]  ;;  %v6013_v18 = vld [vmem:[#allocation21_spill] sm:$0xff]  ;;  %v6016_v59 = vld [vmem:[#allocation24_spill] sm:$0xff] }
 0x1cc   :  { %v984_v30 = vpop.f32.mrf.mxu0 }
 0x1cd   :  { %v985_v53 = vadd.f32 %v984_v30, %v911_v35 }
 0x1ce   :  { %v4212_v58 = vpop.f32.mrf.mxu0 }
 0x1cf   :  { %v1057_v0 = vadd.f32 %v1056_v7, %v985_v53  ;;  %v6008_v7 = vld [vmem:[#allocation32_spill] sm:$0xff]  ;;  %v6010_v53 = vld [vmem:[#allocation33_spill] sm:$0xff] }
 0x1d0   :  { %v6012_v58 = vld [vmem:[#allocation20_spill] sm:$0xff] }
 0x1d1   :  { %v1060_v34 = vmul.f32 %v1057_v0, %v5429_v43  ;;  %v6017_v43 = vld [vmem:[#allocation25_spill] sm:$0xff] }
 0x1d3   :  { %v5432_v40 = vand.u32 4294901760, %v1060_v34 }
 0x1d5   :  { %v5435_v19 = vsub.f32 %v1060_v34, %v5432_v40  ;;  %4286 = vmatmul.mubr.f32.vlgmr.msra.gmra.mxu1 %v5432_v40  ;;  %v5608_v34 = vand.u32 4294901760, %v1702_v63 }
 0x1d6   :  { %4324 = vmatpush3.msra.mxu1 %v5128_v21  ;;  %4355 = vmatprep.mubr.msk.f32.mxu1 %vm5975_vm0, %v6004_v46 }
 0x1d7   :  { %4325 = vmatprep.subr.mxu1 %v6004_v46  ;;  %v1144_v35 = vand.u32 4294901760, %v5435_v19 }
 0x1d8   :  { %4326 = vmatpush3.msra.mxu1 %v5130_v22 }
 0x1d9   :  { %4327 = vmatprep.subr.mxu1 %v6004_v46  ;;  %v1145_v0 = vsub.f32 %v5435_v19, %v1144_v35 }
 0x1da   :  { %4328 = vmatpush3.msra.mxu1 %v5132_v23 }
 0x1db   :  { %4329 = vmatprep.subr.mxu1 %v6004_v46  ;;  %v1146_v30 = vand.u32 4294901760, %v1145_v0  ;;  %v6019_v0 = vld [vmem:[#allocation27_spill] sm:$0xff] }
 0x1dc   :  { %4330 = vmatpush3.msra.mxu1 %v5137_v26 }
 0x1dd   :  { %4331 = vmatprep.subr.mxu1 %v6004_v46  ;;  %4251 = vmatmul.mubr.f32.vlgmr.msra.gmra.mxu0 %v1146_v30  ;;  %v6020_v30 = vld [vmem:[#allocation29_spill] sm:$0xff] }
 0x1de   :  { %4289 = vmatpush3.msra.mxu0 %v5142_v27  ;;  %4332 = vmatpush3.msra.mxu1 %v5204_v49 }
 0x1df   :  { %4290 = vmatprep.subr.mxu0 %v6004_v46  ;;  %4333 = vmatprep.subr.mxu1 %v6004_v46 }
 0x1e0   :  { %4291 = vmatpush3.msra.mxu0 %v5145_v28  ;;  %4334 = vmatpush3.msra.mxu1 %v5212_v52 }
 0x1e1   :  { %4292 = vmatprep.subr.mxu0 %v6004_v46  ;;  %4335 = vmatprep.subr.mxu1 %v6004_v46 }
 0x1e2   :  { %4293 = vmatpush3.msra.mxu0 %v5148_v29  ;;  %4336 = vmatpush3.msra.mxu1 %v5225_v57 }
 0x1e3   :  { %4294 = vmatprep.subr.mxu0 %v6004_v46  ;;  %4337 = vmatprep.subr.mxu1 %v6004_v46 }
 0x1e4   :  { %4295 = vmatpush3.msra.mxu0 %v5155_v31  ;;  %4338 = vmatpush3.msra.mxu1 %v5240_v62 }
 0x1e5   :  { %4296 = vmatprep.subr.mxu0 %v6004_v46  ;;  %4339 = vmatprep.subr.mxu1 %v6004_v46 }
 0x1e6   :  { %4297 = vmatpush3.msra.mxu0 %v5210_v51  ;;  %4340 = vmatpush3.msra.mxu1 %v5258_v5 }
 0x1e7   :  { %4298 = vmatprep.subr.mxu0 %v6004_v46  ;;  %4341 = vmatprep.subr.mxu1 %v6004_v46 }
 0x1e8   :  { %4299 = vmatpush3.msra.mxu0 %v5223_v55  ;;  %4342 = vmatpush3.msra.mxu1 %v5272_v10 }
 0x1e9   :  { %4300 = vmatprep.subr.mxu0 %v6004_v46  ;;  %4343 = vmatprep.subr.mxu1 %v6004_v46 }
 0x1ea   :  { %4301 = vmatpush3.msra.mxu0 %v5238_v61  ;;  %4344 = vmatpush3.msra.mxu1 %v5290_v16 }
 0x1eb   :  { %4302 = vmatprep.subr.mxu0 %v6004_v46  ;;  %4345 = vmatprep.subr.mxu1 %v6004_v46 }
 0x1ec   :  { %4303 = vmatpush3.msra.mxu0 %v5255_v4  ;;  %4346 = vmatpush3.msra.mxu1 %v5310_v25 }
 0x1ed   :  { %4304 = vmatprep.subr.mxu0 %v6004_v46  ;;  %4347 = vmatprep.subr.mxu1 %v6004_v46 }
 0x1ee   :  { %4305 = vmatpush3.msra.mxu0 %v5276_v11  ;;  %4348 = vmatpush3.msra.mxu1 %v5329_v50 }
 0x1ef   :  { %4306 = vmatprep.subr.mxu0 %v6004_v46  ;;  %4349 = vmatprep.subr.mxu1 %v6004_v46 }
 0x1f0   :  { %4307 = vmatpush3.msra.mxu0 %v5288_v15  ;;  %4350 = vmatpush3.msra.mxu1 %v5351_v8 }
 0x1f1   :  { %4308 = vmatprep.subr.mxu0 %v6004_v46  ;;  %4351 = vmatprep.subr.mxu1 %v6004_v46 }
 0x1f2   :  { %4309 = vmatpush3.msra.mxu0 %v5308_v24  ;;  %4352 = vmatpush3.msra.mxu1 %v5365_v41 }
 0x1f3   :  { %4310 = vmatprep.subr.mxu0 %v6004_v46  ;;  %4353 = vmatprep.subr.mxu1 %v6004_v46 }
 0x1f4   :  { %4311 = vmatpush3.msra.mxu0 %v5327_v48  ;;  %4354 = vmatpush3.msra.mxu1 %v5384_v37 }
 0x1f5   :  { %4312 = vmatprep.subr.mxu0 %v6004_v46  ;;  %4356 = vmatmul.mubr.f32.vlgmr.msra.gmra.mxu1 %v1144_v35  ;;  %v5619_v35 = vsub.f32 %v1702_v63, %v5608_v34 }
 0x1f6   :  { %4393 = vmatprep.subr.mxu1 %v6004_v46  ;;  %4313 = vmatpush3.msra.mxu0 %v5347_v6 }
 0x1f7   :  { %4394 = vmatpush3.msra.mxu1 %v5128_v21  ;;  %4314 = vmatprep.subr.mxu0 %v6004_v46 }
 0x1f8   :  { %4395 = vmatprep.subr.mxu1 %v6004_v46  ;;  %4315 = vmatpush3.msra.mxu0 %v5370_v42 }
 0x1f9   :  { %4396 = vmatpush3.msra.mxu1 %v5130_v22  ;;  %4316 = vmatprep.subr.mxu0 %v6004_v46 }
 0x1fa   :  { %4397 = vmatprep.subr.mxu1 %v6004_v46  ;;  %4317 = vmatpush3.msra.mxu0 %v5382_v33 }
 0x1fb   :  { %4398 = vmatpush3.msra.mxu1 %v5132_v23  ;;  %4318 = vmatprep.subr.mxu0 %v6004_v46 }
 0x1fc   :  { %4399 = vmatprep.subr.mxu1 %v6004_v46  ;;  %4319 = vmatpush3.msra.mxu0 %v5399_v12 }
 0x1fd   :  { %4320 = vmatprep.mubr.msk.f32.mxu0 %vm5975_vm0, %v6004_v46  ;;  %4400 = vmatpush3.msra.mxu1 %v5137_v26 }
 0x1fe   :  { %4321 = vmatmul.mubr.f32.vlgmr.msra.gmra.mxu0 %v5435_v19  ;;  %4358 = vmatprep.subr.mxu0 %v6004_v46  ;;  %v6018_v19 = vld [vmem:[#allocation26_spill] sm:$0xff] }
 0x1ff   :  { %4401 = vmatprep.subr.mxu1 %v6004_v46  ;;  %4359 = vmatpush3.msra.mxu0 %v5160_v32 }
 0x200   :  { %4402 = vmatpush3.msra.mxu1 %v5204_v49  ;;  %4360 = vmatprep.subr.mxu0 %v6004_v46 }
 0x201   :  { %4403 = vmatprep.subr.mxu1 %v6004_v46  ;;  %4361 = vmatpush3.msra.mxu0 %v5163_v36 }
 0x202   :  { %4404 = vmatpush3.msra.mxu1 %v5212_v52  ;;  %4362 = vmatprep.subr.mxu0 %v6004_v46 }
 0x203   :  { %4405 = vmatprep.subr.mxu1 %v6004_v46  ;;  %4363 = vmatpush3.msra.mxu0 %v5166_v38 }
 0x204   :  { %4406 = vmatpush3.msra.mxu1 %v5225_v57  ;;  %4364 = vmatprep.subr.mxu0 %v6004_v46 }
 0x205   :  { %4407 = vmatprep.subr.mxu1 %v6004_v46  ;;  %4365 = vmatpush3.msra.mxu0 %v5170_v39 }
 0x206   :  { %4408 = vmatpush3.msra.mxu1 %v5240_v62  ;;  %4366 = vmatprep.subr.mxu0 %v6004_v46 }
 0x207   :  { %4409 = vmatprep.subr.mxu1 %v6004_v46  ;;  %4367 = vmatpush3.msra.mxu0 %v5220_v54 }
 0x208   :  { %4410 = vmatpush3.msra.mxu1 %v5258_v5  ;;  %4368 = vmatprep.subr.mxu0 %v6004_v46 }
 0x209   :  { %4411 = vmatprep.subr.mxu1 %v6004_v46  ;;  %4369 = vmatpush3.msra.mxu0 %v5235_v60 }
 0x20a   :  { %4412 = vmatpush3.msra.mxu1 %v5272_v10  ;;  %4370 = vmatprep.subr.mxu0 %v6004_v46 }
 0x20b   :  { %4413 = vmatprep.subr.mxu1 %v6004_v46  ;;  %4371 = vmatpush3.msra.mxu0 %v5252_v3 }
 0x20c   :  { %4414 = vmatpush3.msra.mxu1 %v5290_v16  ;;  %4372 = vmatprep.subr.mxu0 %v6004_v46 }
 0x20d   :  { %4415 = vmatprep.subr.mxu1 %v6004_v46  ;;  %4373 = vmatpush3.msra.mxu0 %v5270_v9 }
 0x20e   :  { %4416 = vmatpush3.msra.mxu1 %v5310_v25  ;;  %4374 = vmatprep.subr.mxu0 %v6004_v46 }
 0x20f   :  { %4417 = vmatprep.subr.mxu1 %v6004_v46  ;;  %4375 = vmatpush3.msra.mxu0 %v5295_v17 }
 0x210   :  { %4418 = vmatpush3.msra.mxu1 %v5329_v50  ;;  %4376 = vmatprep.subr.mxu0 %v6004_v46 }
 0x211   :  { %4419 = vmatprep.subr.mxu1 %v6004_v46  ;;  %4377 = vmatpush3.msra.mxu0 %v5305_v20 }
 0x212   :  { %4420 = vmatpush3.msra.mxu1 %v5351_v8  ;;  %4378 = vmatprep.subr.mxu0 %v6004_v46 }
 0x213   :  { %4421 = vmatprep.subr.mxu1 %v6004_v46  ;;  %4379 = vmatpush3.msra.mxu0 %v5324_v45 }
 0x214   :  { %4422 = vmatpush3.msra.mxu1 %v5365_v41  ;;  %4380 = vmatprep.subr.mxu0 %v6004_v46 }
 0x215   :  { %4423 = vmatprep.subr.mxu1 %v6004_v46  ;;  %4381 = vmatpush3.msra.mxu0 %v5344_v2 }
 0x216   :  { %4424 = vmatpush3.msra.mxu1 %v5384_v37  ;;  %4425 = vmatprep.mubr.msk.f32.mxu1 %vm5975_vm0, %v6004_v46 }
 0x217   :  { %4382 = vmatprep.subr.mxu0 %v6004_v46  ;;  %4426 = vmatmul.mubr.f32.vlgmr.msra.gmra.mxu1 %v5432_v40 }
 0x218   :  { %4383 = vmatpush3.msra.mxu0 %v6005_v44  ;;  %4390 = vmatprep.mubr.msk.f32.mxu0 %vm5975_vm0, %v6004_v46 }
 0x219   :  { %4384 = vmatprep.subr.mxu0 %v6004_v46  ;;  %4463 = vmatprep.subr.mxu1 %v6004_v46 }
 0x21a   :  { %4385 = vmatpush3.msra.mxu0 %v6006_v47  ;;  %4464 = vmatpush3.msra.mxu1 %v6007_v1  ;;  %v6021_v1 = vld [vmem:[#allocation31_spill] sm:$0xff] }
 0x21b   :  { %4386 = vmatprep.subr.mxu0 %v6004_v46  ;;  %4465 = vmatprep.subr.mxu1 %v6004_v46 }
 0x21c   :  { %4387 = vmatpush3.msra.mxu0 %v6008_v7  ;;  %4466 = vmatpush3.msra.mxu1 %v6009_v13  ;;  %v1786_v13 = vand.u32 4294901760, %v5619_v35 }
 0x21d   :  { %4388 = vmatprep.subr.mxu0 %v6004_v46  ;;  %4467 = vmatprep.subr.mxu1 %v6004_v46 }
 0x21e   :  { %4389 = vmatpush3.msra.mxu0 %v6010_v53  ;;  %4468 = vmatpush3.msra.mxu1 %v6011_v14  ;;  %v6022_v14 = vld [vmem:[#allocation34_spill] sm:$0xff] }
 0x21f   :  { %4391 = vmatmul.mubr.f32.vlgmr.msra.gmra.mxu0 %v5432_v40  ;;  %4428 = vmatprep.subr.mxu0 %v6004_v46  ;;  %v6014_v40 = vld [vmem:[#allocation22_spill] sm:$0xff] }
 0x220   :  { %4429 = vmatpush3.msra.mxu0 %v5128_v21  ;;  %4469 = vmatprep.subr.mxu1 %v6004_v46 }
 0x221   :  { %4430 = vmatprep.subr.mxu0 %v6004_v46  ;;  %4470 = vmatpush3.msra.mxu1 %v6012_v58  ;;  %v6023_v58 = vld [vmem:[#allocation35_spill] sm:$0xff] }
 0x222   :  { %4431 = vmatpush3.msra.mxu0 %v5130_v22  ;;  %4471 = vmatprep.subr.mxu1 %v6004_v46 }
 0x223   :  { %4432 = vmatprep.subr.mxu0 %v6004_v46  ;;  %4472 = vmatpush3.msra.mxu1 %v6013_v18  ;;  %v1787_v18 = vsub.f32 %v5619_v35, %v1786_v13 }
 0x224   :  { %4433 = vmatpush3.msra.mxu0 %v5132_v23  ;;  %4473 = vmatprep.subr.mxu1 %v6004_v46 }
 0x225   :  { %4434 = vmatprep.subr.mxu0 %v6004_v46  ;;  %4474 = vmatpush3.msra.mxu1 %v6014_v40  ;;  %v6024_v40 = vld [vmem:[#allocation36_spill] sm:$0xff]  ;;  %v1788_v63 = vand.u32 4294901760, %v1787_v18  ;;  %v4916_v18 = vmov 10  }
 0x226   :  { %4435 = vmatpush3.msra.mxu0 %v5137_v26  ;;  %4475 = vmatprep.subr.mxu1 %v6004_v46 }
 0x227   :  { %4436 = vmatprep.subr.mxu0 %v6004_v46  ;;  %4476 = vmatpush3.msra.mxu1 %v6015_v56 }
 0x228   :  { %4437 = vmatpush3.msra.mxu0 %v5204_v49  ;;  %4477 = vmatprep.subr.mxu1 %v6004_v46 }
 0x229   :  { %4438 = vmatprep.subr.mxu0 %v6004_v46  ;;  %4478 = vmatpush3.msra.mxu1 %v6016_v59 }
 0x22a   :  { %4439 = vmatpush3.msra.mxu0 %v5212_v52  ;;  %4479 = vmatprep.subr.mxu1 %v6004_v46 }
 0x22b   :  { %4440 = vmatprep.subr.mxu0 %v6004_v46  ;;  %4480 = vmatpush3.msra.mxu1 %v6017_v43 }
 0x22c   :  { %4441 = vmatpush3.msra.mxu0 %v5225_v57  ;;  %4481 = vmatprep.subr.mxu1 %v6004_v46 }
 0x22d   :  { %4442 = vmatprep.subr.mxu0 %v6004_v46  ;;  %4482 = vmatpush3.msra.mxu1 %v6018_v19 }
 0x22e   :  { %4443 = vmatpush3.msra.mxu0 %v5240_v62  ;;  %4483 = vmatprep.subr.mxu1 %v6004_v46 }
 0x22f   :  { %4444 = vmatprep.subr.mxu0 %v6004_v46  ;;  %4484 = vmatpush3.msra.mxu1 %v6019_v0 }
 0x230   :  { %4445 = vmatpush3.msra.mxu0 %v5258_v5  ;;  %4485 = vmatprep.subr.mxu1 %v6004_v46 }
 0x231   :  { %4446 = vmatprep.subr.mxu0 %v6004_v46  ;;  %4486 = vmatpush3.msra.mxu1 %v6020_v30 }
 0x232   :  { %4447 = vmatpush3.msra.mxu0 %v5272_v10  ;;  %4487 = vmatprep.subr.mxu1 %v6004_v46 }
 0x233   :  { %4448 = vmatprep.subr.mxu0 %v6004_v46  ;;  %4488 = vmatpush3.msra.mxu1 %v6021_v1 }
 0x234   :  { %4449 = vmatpush3.msra.mxu0 %v5290_v16  ;;  %4489 = vmatprep.subr.mxu1 %v6004_v46 }
 0x235   :  { %4450 = vmatprep.subr.mxu0 %v6004_v46  ;;  %4490 = vmatpush3.msra.mxu1 %v6022_v14 }
 0x236   :  { %4451 = vmatpush3.msra.mxu0 %v5310_v25  ;;  %4491 = vmatprep.subr.mxu1 %v6004_v46 }
 0x237   :  { %4452 = vmatprep.subr.mxu0 %v6004_v46  ;;  %4492 = vmatpush3.msra.mxu1 %v6023_v58 }
 0x238   :  { %4453 = vmatpush3.msra.mxu0 %v5329_v50  ;;  %4493 = vmatprep.subr.mxu1 %v6004_v46 }
 0x239   :  { %4454 = vmatprep.subr.mxu0 %v6004_v46  ;;  %4460 = vmatprep.mubr.msk.f32.mxu0 %vm5975_vm0, %v6004_v46 }
 0x23a   :  { %4455 = vmatpush3.msra.mxu0 %v5351_v8  ;;  %4494 = vmatpush3.msra.mxu1 %v6024_v40  ;;  %v4917_v40 = vmov 11  }
 0x23b   :  { %4456 = vmatprep.subr.mxu0 %v6004_v46  ;;  %4495 = vmatprep.mubr.msk.f32.mxu1 %vm5975_vm0, %v6004_v46 }
 0x23c   :  { %4457 = vmatpush3.msra.mxu0 %v5365_v41  ;;  %4533 = vmatprep.subr.mxu1 %v6004_v46 }
 0x23d   :  { %4458 = vmatprep.subr.mxu0 %v6004_v46  ;;  %4496 = vmatmul.mubr.f32.vlgmr.msra.gmra.mxu1 %v5608_v34 }
 0x23e   :  { %4459 = vmatpush3.msra.mxu0 %v5384_v37  ;;  %4534 = vmatpush3.msra.mxu1 %v5128_v21 }
 0x23f   :  { %4461 = vmatmul.mubr.f32.vlgmr.msra.gmra.mxu0 %v1788_v63  ;;  %4498 = vmatprep.subr.mxu0 %v6004_v46 }
 0x240   :  { %4499 = vmatpush3.msra.mxu0 %v5142_v27  ;;  %4535 = vmatprep.subr.mxu1 %v6004_v46 }
 0x241   :  { %4500 = vmatprep.subr.mxu0 %v6004_v46  ;;  %4536 = vmatpush3.msra.mxu1 %v5130_v22 }
 0x242   :  { %4501 = vmatpush3.msra.mxu0 %v5145_v28  ;;  %4537 = vmatprep.subr.mxu1 %v6004_v46 }
 0x243   :  { %4502 = vmatprep.subr.mxu0 %v6004_v46  ;;  %4538 = vmatpush3.msra.mxu1 %v5132_v23 }
 0x244   :  { %4503 = vmatpush3.msra.mxu0 %v5148_v29  ;;  %4539 = vmatprep.subr.mxu1 %v6004_v46 }
 0x245   :  { %4504 = vmatprep.subr.mxu0 %v6004_v46  ;;  %4540 = vmatpush3.msra.mxu1 %v5137_v26 }
 0x246   :  { %4505 = vmatpush3.msra.mxu0 %v5155_v31  ;;  %4541 = vmatprep.subr.mxu1 %v6004_v46 }
 0x247   :  { %4506 = vmatprep.subr.mxu0 %v6004_v46  ;;  %4542 = vmatpush3.msra.mxu1 %v5204_v49 }
 0x248   :  { %4507 = vmatpush3.msra.mxu0 %v5210_v51  ;;  %4543 = vmatprep.subr.mxu1 %v6004_v46 }
 0x249   :  { %4508 = vmatprep.subr.mxu0 %v6004_v46  ;;  %4544 = vmatpush3.msra.mxu1 %v5212_v52 }
 0x24a   :  { %4509 = vmatpush3.msra.mxu0 %v5223_v55  ;;  %4545 = vmatprep.subr.mxu1 %v6004_v46 }
 0x24b   :  { %4510 = vmatprep.subr.mxu0 %v6004_v46  ;;  %4546 = vmatpush3.msra.mxu1 %v5225_v57 }
 0x24c   :  { %4511 = vmatpush3.msra.mxu0 %v5238_v61  ;;  %4547 = vmatprep.subr.mxu1 %v6004_v46 }
 0x24d   :  { %4512 = vmatprep.subr.mxu0 %v6004_v46  ;;  %4548 = vmatpush3.msra.mxu1 %v5240_v62 }
 0x24e   :  { %4513 = vmatpush3.msra.mxu0 %v5255_v4  ;;  %4549 = vmatprep.subr.mxu1 %v6004_v46 }
 0x24f   :  { %4514 = vmatprep.subr.mxu0 %v6004_v46  ;;  %4550 = vmatpush3.msra.mxu1 %v5258_v5 }
 0x250   :  { %4515 = vmatpush3.msra.mxu0 %v5276_v11  ;;  %4551 = vmatprep.subr.mxu1 %v6004_v46 }
 0x251   :  { %4516 = vmatprep.subr.mxu0 %v6004_v46  ;;  %4552 = vmatpush3.msra.mxu1 %v5272_v10 }
 0x252   :  { %4517 = vmatpush3.msra.mxu0 %v5288_v15  ;;  %4553 = vmatprep.subr.mxu1 %v6004_v46 }
 0x253   :  { %4518 = vmatprep.subr.mxu0 %v6004_v46  ;;  %4554 = vmatpush3.msra.mxu1 %v5290_v16 }
 0x254   :  { %4519 = vmatpush3.msra.mxu0 %v5308_v24  ;;  %4555 = vmatprep.subr.mxu1 %v6004_v46 }
 0x255   :  { %4520 = vmatprep.subr.mxu0 %v6004_v46  ;;  %4556 = vmatpush3.msra.mxu1 %v5310_v25 }
 0x256   :  { %4521 = vmatpush3.msra.mxu0 %v5327_v48  ;;  %4557 = vmatprep.subr.mxu1 %v6004_v46 }
 0x257   :  { %4522 = vmatprep.subr.mxu0 %v6004_v46  ;;  %4558 = vmatpush3.msra.mxu1 %v5329_v50 }
 0x258   :  { %4523 = vmatpush3.msra.mxu0 %v5347_v6  ;;  %4559 = vmatprep.subr.mxu1 %v6004_v46  ;;  %v6025_v6 = vld [vmem:[#allocation15_spill] sm:$0xff] }
 0x259   :  { %4524 = vmatprep.subr.mxu0 %v6004_v46  ;;  %4560 = vmatpush3.msra.mxu1 %v5351_v8  ;;  %v3833_v56 = vmul.f32 -1.442695, %v6025_v6 }
 0x25a   :  { %4525 = vmatpush3.msra.mxu0 %v5370_v42  ;;  %4561 = vmatprep.subr.mxu1 %v6004_v46 }
 0x25b   :  { %4526 = vmatprep.subr.mxu0 %v6004_v46  ;;  %4562 = vmatpush3.msra.mxu1 %v5365_v41 }
 0x25c   :  { %4527 = vmatpush3.msra.mxu0 %v5382_v33  ;;  %4563 = vmatprep.subr.mxu1 %v6004_v46 }
 0x25d   :  { %4528 = vmatprep.subr.mxu0 %v6004_v46  ;;  %4530 = vmatprep.mubr.msk.f32.mxu0 %vm5975_vm0, %v6004_v46 }
 0x25e   :  { %4529 = vmatpush3.msra.mxu0 %v5399_v12  ;;  %4564 = vmatpush3.msra.mxu1 %v5384_v37 }
 0x25f   :  { %4531 = vmatmul.mubr.f32.vlgmr.msra.gmra.mxu0 %v5619_v35  ;;  %4565 = vmatprep.mubr.msk.f32.mxu1 %vm5975_vm0, %v6004_v46 }
 0x260   :  { %4568 = vmatprep.subr.mxu0 %v6004_v46  ;;  %4603 = vmatprep.subr.mxu1 %v6004_v46 }
 0x261   :  { %4566 = vmatmul.mubr.f32.vlgmr.msra.gmra.mxu1 %v1786_v13  ;;  %4569 = vmatpush3.msra.mxu0 %v5160_v32 }
 0x262   :  { %4604 = vmatpush3.msra.mxu1 %v5128_v21  ;;  %4570 = vmatprep.subr.mxu0 %v6004_v46 }
 0x263   :  { %4605 = vmatprep.subr.mxu1 %v6004_v46  ;;  %4571 = vmatpush3.msra.mxu0 %v5163_v36 }
 0x264   :  { %4606 = vmatpush3.msra.mxu1 %v5130_v22  ;;  %4572 = vmatprep.subr.mxu0 %v6004_v46 }
 0x265   :  { %4607 = vmatprep.subr.mxu1 %v6004_v46  ;;  %4573 = vmatpush3.msra.mxu0 %v5166_v38 }
 0x266   :  { %4608 = vmatpush3.msra.mxu1 %v5132_v23  ;;  %4574 = vmatprep.subr.mxu0 %v6004_v46 }
 0x267   :  { %4609 = vmatprep.subr.mxu1 %v6004_v46  ;;  %4575 = vmatpush3.msra.mxu0 %v5170_v39 }
 0x268   :  { %4610 = vmatpush3.msra.mxu1 %v5137_v26  ;;  %4576 = vmatprep.subr.mxu0 %v6004_v46 }
 0x269   :  { %4611 = vmatprep.subr.mxu1 %v6004_v46  ;;  %4577 = vmatpush3.msra.mxu0 %v5220_v54 }
 0x26a   :  { %4612 = vmatpush3.msra.mxu1 %v5204_v49  ;;  %4578 = vmatprep.subr.mxu0 %v6004_v46 }
 0x26b   :  { %4613 = vmatprep.subr.mxu1 %v6004_v46  ;;  %4579 = vmatpush3.msra.mxu0 %v5235_v60 }
 0x26c   :  { %4614 = vmatpush3.msra.mxu1 %v5212_v52  ;;  %4580 = vmatprep.subr.mxu0 %v6004_v46 }
 0x26d   :  { %4615 = vmatprep.subr.mxu1 %v6004_v46  ;;  %4581 = vmatpush3.msra.mxu0 %v5252_v3 }
 0x26e   :  { %4616 = vmatpush3.msra.mxu1 %v5225_v57  ;;  %4582 = vmatprep.subr.mxu0 %v6004_v46 }
 0x26f   :  { %4617 = vmatprep.subr.mxu1 %v6004_v46  ;;  %4583 = vmatpush3.msra.mxu0 %v5270_v9 }
 0x270   :  { %4618 = vmatpush3.msra.mxu1 %v5240_v62  ;;  %4584 = vmatprep.subr.mxu0 %v6004_v46 }
 0x271   :  { %4619 = vmatprep.subr.mxu1 %v6004_v46  ;;  %4585 = vmatpush3.msra.mxu0 %v5295_v17 }
 0x272   :  { %4620 = vmatpush3.msra.mxu1 %v5258_v5  ;;  %4586 = vmatprep.subr.mxu0 %v6004_v46 }
 0x273   :  { %4621 = vmatprep.subr.mxu1 %v6004_v46  ;;  %4587 = vmatpush3.msra.mxu0 %v5305_v20 }
 0x274   :  { %4622 = vmatpush3.msra.mxu1 %v5272_v10  ;;  %4588 = vmatprep.subr.mxu0 %v6004_v46 }
 0x275   :  { %4623 = vmatprep.subr.mxu1 %v6004_v46  ;;  %4589 = vmatpush3.msra.mxu0 %v5324_v45 }
 0x276   :  { %4624 = vmatpush3.msra.mxu1 %v5290_v16  ;;  %4590 = vmatprep.subr.mxu0 %v6004_v46 }
 0x277   :  { %4625 = vmatprep.subr.mxu1 %v6004_v46  ;;  %4591 = vmatpush3.msra.mxu0 %v5344_v2 }
 0x278   :  { %4626 = vmatpush3.msra.mxu1 %v5310_v25  ;;  %4592 = vmatprep.subr.mxu0 %v6004_v46  ;;  %v2348_v25 = vpop.xlane.xlu0 %2347 }
 0x279   :  { %4627 = vmatprep.subr.mxu1 %v6004_v46  ;;  %4593 = vmatpush3.msra.mxu0 %v6005_v44 }
 0x27a   :  { %4628 = vmatpush3.msra.mxu1 %v5329_v50  ;;  %4594 = vmatprep.subr.mxu0 %v6004_v46  ;;  %v573_v50 = vpop.xlane.xlu1 %572 }
 0x27b   :  { %4629 = vmatprep.subr.mxu1 %v6004_v46  ;;  %4595 = vmatpush3.msra.mxu0 %v6006_v47 }
 0x27c   :  { %4630 = vmatpush3.msra.mxu1 %v5351_v8  ;;  %4596 = vmatprep.subr.mxu0 %v6004_v46  ;;  %v574_v8 = vsub.f32 %v6025_v6, %v573_v50  ;;  %v2356_v42 = vpop.permute.xlu0 %2355 }
 0x27d   :  { %4631 = vmatprep.subr.mxu1 %v6004_v46  ;;  %4597 = vmatpush3.msra.mxu0 %v6008_v7 }
 0x27e   :  { %4632 = vmatpush3.msra.mxu1 %v5365_v41  ;;  %4598 = vmatprep.subr.mxu0 %v6004_v46  ;;  %v575_v44 = vmul.f32 1.442695, %v574_v8  ;;  %v4926_v8 = vmov 2139095040  }
 0x27f   :  { %4633 = vmatprep.subr.mxu1 %v6004_v46  ;;  %4599 = vmatpush3.msra.mxu0 %v6010_v53  ;;  %v4915_v53 = vmov 9  }
 0x280   :  { %4600 = vmatprep.mubr.msk.f32.mxu0 %vm5975_vm0, %v6004_v46  ;;  %4634 = vmatpush3.msra.mxu1 %v5384_v37 }
 0x281   :  { %4635 = vmatprep.mubr.msk.f32.mxu1 %vm5975_vm0, %v6004_v46  ;;  %4601 = vmatmul.mubr.f32.vlgmr.msra.gmra.mxu0 %v5608_v34 }
 0x282   :  { %4636 = vmatmul.mubr.f32.vlgmr.msra.gmra.mxu1 %v5608_v34  ;;  %4645 = vmatprep.subr.mxu1 %v6004_v46 }
 0x283   :  { %4649 = vmatprep.mubr.msk.f32.mxu1 %vm5975_vm0, %v6004_v46  ;;  %4638 = vmatprep.subr.mxu0 %v6004_v46 }
 0x284   :  { %4642 = vmatprep.mubr.msk.f32.mxu0 %vm5975_vm0, %v6004_v46  ;;  %4813 = vset.pattern.permute.xlu1 %v4915_v53 }
 0x285   :  { %4814 = vset.pattern.permute.xlu0 %v4916_v18  ;;  %v605_v18 = vld [vmem:[%s5934_s6 + $0x8] sm:$0xff] }
 0x295   :  { %v1299_v33 = vpop.f32.mrf.mxu1 }
 0x297   :  { %v4287_v21 = vpop.f32.mrf.mxu1 }
 0x29d   :  { %v1148_v37 = vpop.f32.mrf.mxu0 }
 0x29e   :  { %v1300_v22 = vadd.f32 %v1299_v33, %v1148_v37 }
 0x29f   :  { %v4252_v23 = vpop.f32.mrf.mxu0 }
 0x2b5   :  { %v1492_v26 = vpop.f32.mrf.mxu1 }
 0x2b7   :  { %v4357_v27 = vpop.f32.mrf.mxu1 }
 0x2be   :  { %v1403_v28 = vpop.f32.mrf.mxu0 }
 0x2bf   :  { %v1404_v29 = vadd.f32 %v1403_v28, %v1300_v22  ;;  %v4918_v22 = vmov 12   ;;  %v2378_v28 = vld [vmem:[%s5931_s3] sm:$0x3] }
 0x2c0   :  { %v4322_v31 = vpop.f32.mrf.mxu0 }
 0x2c1   :  { %v1493_v32 = vadd.f32 %v1492_v26, %v1404_v29  ;;  %v4920_v26 = vmov 13  }
 0x2d7   :  { %v1698_v36 = vpop.f32.mrf.mxu1 }
 0x2d9   :  { %v4427_v38 = vpop.f32.mrf.mxu1 }
 0x2df   :  { %v1611_v39 = vpop.f32.mrf.mxu0 }
 0x2e0   :  { %v1612_v49 = vadd.f32 %v1611_v39, %v1493_v32  ;;  %v6026_v39 = vld [vmem:[#allocation16_spill] sm:$0xff] }
 0x2e1   :  { %v4392_v51 = vpop.f32.mrf.mxu0 }
 0x2e2   :  { %v1699_v52 = vadd.f32 %v1698_v36, %v1612_v49  ;;  %v587_v49 = vadd.f32 1.0, %v6026_v39 }
 0x2fd   :  { %v1941_v54 = vpop.f32.mrf.mxu1 }
 0x2ff   :  { %v1790_v55 = vpop.f32.mrf.mxu0  ;;  %v4497_v57 = vpop.f32.mrf.mxu1 }
 0x300   :  { %v1942_v5 = vadd.f32 %v1941_v54, %v1790_v55 }
 0x301   :  { %v4462_v60 = vpop.f32.mrf.mxu0 }
 0x31f   :  { %v2045_v61 = vpop.f32.mrf.mxu0 }
 0x320   :  { %v2046_v9 = vadd.f32 %v2045_v61, %v1942_v5 }
 0x321   :  { %v2134_v62 = vpop.f32.mrf.mxu1  ;;  %v4532_v3 = vpop.f32.mrf.mxu0 }
 0x322   :  { %v2135_v10 = vadd.f32 %v2134_v62, %v2046_v9 }
 0x323   :  { %v4567_v4 = vpop.f32.mrf.mxu1 }
 0x341   :  { %v2253_v11 = vpop.f32.mrf.mxu0 }
 0x342   :  { %v2254_v15 = vadd.f32 %v2253_v11, %v2135_v10  ;;  %v2340_v16 = vpop.f32.mrf.mxu1 }
 0x343   :  { %v4602_v17 = vpop.f32.mrf.mxu0 }
 0x344   :  { %v2341_v20 = vadd.f32 %v2340_v16, %v2254_v15  ;;  %v4637_v24 = vpop.f32.mrf.mxu1 }
 0x346   :  { %v2349_v45 = vmul.f32 %v2348_v25, %v2341_v20 }
 0x348   :  { %v2350_v48 = vmax.f32 %v2349_v45, 1e-16 }
 0x34a   :  { %4823 = vrsqrt.f32 %v2350_v48 }
 0x34b   :  { %4825 = vpow2.f32 %v575_v44  ;;  %v4927_v44 = vmov 0  }
 0x34c   :  { %4827 = vpow2.f32 %v3833_v56 }
 0x357   :  { %v4824_v2 = vpop.eup %4823 }
 0x358   :  { %v2352_v41 = vmul.f32 %v4824_v2, %v1699_v52  ;;  %v4826_v7 = vpop.eup %4825 }
 0x359   :  { %v4828_v43 = vpop.eup %4827 }
 0x35a   :  { %v2358_v12 = vmul.f32 %v2356_v42, %v2352_v41  ;;  %v567_v30 = vadd.f32 1.0, %v4828_v43 }
 0x35c   :  { %v2360_v47 = vsel %vm2359_vm7, %v2358_v12, -inf }
 0x35d   :  { %2361 = vmax.xlane.f32.xlu1 %v2360_v47 }
 0x36e   :  { %578 = vrot.lane.b32.xlu1 %v4826_v7, %s4914_s5 }
 0x3e6   :  { %v2362_v59 = vpop.xlane.xlu1 %2361 }
 0x3e7   :  { %v2363_v34 = vsub.f32 %v2358_v12, %v2362_v59 }
 0x3e9   :  { %v2364_v19 = vmul.f32 1.442695, %v2363_v34 }
 0x3ea   :  { %v579_v35 = vpop.permute.xlu1 %578 }
 0x3eb   :  { %4829 = vpow2.f32 %v2364_v19  ;;  %v582_v0 = vsel %vm581_vm8, %v579_v35, 0.0 }
 0x3ec   :  { %583 = vadd.xlane.f32.xlu1 %v582_v0  ;;  %4831 = vrcp.f32 %v567_v30 }
 0x3f8   :  { %v4830_v1 = vpop.eup %4829 }
 0x3f9   :  { %v2366_v13 = vsel %vm2359_vm7, %v4830_v1, 0.0  ;;  %v4832_v14 = vpop.eup %4831 }
 0x3fa   :  { %2367 = vadd.xlane.f32.xlu0 %v2366_v13  ;;  %v2377_v58 = vsub.f32 1.0, %v4832_v14 }
 0x3fd   :  { %2373 = vperm.xlu1 %4813, %v4832_v14  }
 0x401   :  { %2381 = vperm.xlu1 %4813, %v2377_v58  }
 0x405   :  { %4815 = vset.pattern.permute.xlu1 %v4917_v40  ;;  %v604_v40 = vld [vmem:[%s5934_s6] sm:$0xff]  ;;  %s4928_s6 = smov [#allocation5]  }
 0x406   :  { %s3809_s18 = sshll.u32 %s4928_s6, 4  ;;  %s3810_s18 = int_to_ptr.vmem [resolvable:$true] %s3809_s18 }
 0x407   :  { %s4864_s19 = scalar_lea.vmem %s3810_s18, 32  ;;  %p4869_p6 = scmp.lt.s32.totalorder %s3810_s18, %s3810_s18 }
 0x408   :  { %p4865_p5 = scmp.ne.s32.totalorder %s3810_s18, %s4864_s19  ;;  %p4870_p7 = scmp.lt.s32.totalorder %s4864_s19, %s4864_s19 }
 0x40a   :  { %p4871_p8 = por %p4870_p7, %p4869_p6 }
 0x40c   :  { %p4872_p9 = pnand %p4871_p8, %p4865_p5 }
 0x475   :  { %v584_v63 = vpop.xlane.xlu1 %583 }
 0x476   :  { %4833 = vrcp.f32 %v584_v63  ;;  %v2467_v63 = vand.u32 4294901760, %v605_v18 }
 0x478   :  { %4639 = vmatpush3.msra.mxu0 %v2467_v63 }
 0x479   :  { %v2374_v23 = vpop.permute.xlu1 %2373  ;;  %4640 = vmatprep.subr.mxu0 %v6004_v46 }
 0x47d   :  { %v2382_v29 = vpop.permute.xlu1 %2381 }
 0x47e   :  { %v2384_v32 = vmul.f32 %v2382_v29, %v2378_v28 }
 0x483   :  { %v4834_v33 = vpop.eup %4833  ;;  %v2368_v21 = vpop.xlane.xlu0 %2367 }
 0x484   :  { %4835 = vrcp.f32 %v2368_v21  ;;  %v586_v37 = vmul.f32 %v4834_v33, %v4826_v7  ;;  %v2470_v33 = vand.u32 4294901760, %v604_v40  ;;  %v2545_v21 = vsub.f32 %v605_v18, %v2467_v63 }
 0x486   :  { %2410 = vperm.xlu1 %4815, %v586_v37   ;;  %2405 = vperm.xlu0 %4814, %v586_v37  }
 0x487   :  { %4641 = vmatpush3.msra.mxu0 %v2470_v33 }
 0x488   :  { %4652 = vmatprep.subr.mxu0 %v6004_v46 }
 0x48a   :  { %4816 = vset.pattern.permute.xlu1 %v4918_v22  ;;  %2897 = vrot.lane.b32.xlu0 %v4832_v14, %s4919_s29  ;;  %v2546_v22 = vand.u32 4294901760, %v2545_v21 }
 0x48b   :  { %2416 = vperm.xlu1 %4816, %v586_v37   ;;  %4818 = vset.pattern.permute.xlu0 %v4920_v26  ;;  %v5842_v37 = vsub.f32 %v604_v40, %v2470_v33 }
 0x48e   :  { %3348 = vrot.lane.b32.xlu0 %v6025_v6, %s4921_s30 }
 0x48f   :  { %4817 = vset.pattern.permute.xlu1 %v4920_v26  ;;  %v2547_v26 = vsub.f32 %v2545_v21, %v2546_v22 }
 0x491   :  { %v4836_v27 = vpop.eup %4835  ;;  %v2548_v28 = vand.u32 4294901760, %v2547_v26 }
 0x492   :  { %v2370_v31 = vmul.f32 %v4836_v27, %v4830_v1 }
 0x493   :  { %4646 = vmatpush3.msra.mxu1 %v2548_v28 }
 0x494   :  { %v2376_v36 = vmul.f32 %v2374_v23, %v2370_v31  ;;  %v2553_v23 = vand.u32 4294901760, %v5842_v37  ;;  %4647 = vmatprep.subr.mxu1 %v6004_v46 }
 0x496   :  { %v2385_v38 = vadd.f32 %v2384_v32, %v2376_v36  ;;  %v2554_v27 = vsub.f32 %v5842_v37, %v2553_v23 }
 0x498   :  { %2387 = vrot.lane.b32.xlu1 %v2385_v38, %s4922_s12  ;;  %v2555_v29 = vand.u32 4294901760, %v2554_v27 }
 0x49a   :  { %4648 = vmatpush3.msra.mxu1 %v2555_v29 }
 0x49b   :  { %4659 = vmatprep.subr.mxu1 %v6004_v46 }
 0x49c   :  { %2390 = vrot.lane.b32.xlu1 %v2385_v38, %s4923_s13 }
 0x4a0   :  { %2395 = vrot.lane.b32.xlu1 %v2385_v38, %s4924_s14 }
 0x4a4   :  { %2398 = vrot.lane.b32.xlu1 %v2385_v38, %s4925_s15 }
 0x4a8   :  { %2423 = vperm.xlu1 %4817, %v587_v49  }
 0x501   :  { %v2411_v51 = vpop.permute.xlu1 %2410  ;;  %v2406_v61 = vpop.permute.xlu0 %2405 }
 0x502   :  { %v2413_v3 = vmul.f32 %v2411_v51, %v2385_v38 }
 0x505   :  { %v2898_v49 = vpop.permute.xlu0 %2897 }
 0x506   :  { %v2417_v52 = vpop.permute.xlu1 %2416 }
 0x50a   :  { %v2388_v54 = vpop.permute.xlu1 %2387 }
 0x50e   :  { %v2391_v55 = vpop.permute.xlu1 %2390 }
 0x50f   :  { %v2394_v57 = vsel %vm2393_vm9, %v2388_v54, %v2391_v55 }
 0x510   :  { %v2408_v62 = vmul.f32 %v2406_v61, %v2394_v57 }
 0x512   :  { %v2396_v60 = vpop.permute.xlu1 %2395  ;;  %v2414_v9 = vadd.f32 %v2413_v3, %v2408_v62  ;;  %v3349_v3 = vpop.permute.xlu0 %3348 }
 0x516   :  { %v2399_v4 = vpop.permute.xlu1 %2398 }
 0x517   :  { %v2402_v5 = vsel %vm2401_vm10, %v2396_v60, %v2399_v4  ;;  %v6033_v4 = vld [vmem:[#allocation14_spill] sm:$0xff] }
 0x518   :  { %v2419_v10 = vmul.f32 %v2417_v52, %v2402_v5 }
 0x51a   :  { %v2420_v11 = vadd.f32 %v2419_v10, %v2414_v9 }
 0x51c   :  { %v4740_v15 = vand.u32 2147483647, %v2420_v11  ;;  %vm4761_vm15 = vcmp.eq.f32.partialorder %v2420_v11, 0  ;;  %vm4760_vm9 = vcmp.lt.f32.partialorder %v2420_v11, 0 }
 0x51e   :  { %4837 = vlog2.f32 %v4740_v15  ;;  %vm4764_vm2 = vcmp.gt.f32.partialorder %v4740_v15, 1065353216 }
 0x523   :  { %v2424_v16 = vpop.permute.xlu1 %2423 }
 0x524   :  { %v4744_v17 = vand.u32 2147483647, %v2424_v16  ;;  %v4749_v45 = vtrunc.f32 %v2424_v16  ;;  %vm4748_vm13 = vcmp.lt.f32.partialorder %v2424_v16, 0 }
 0x525   :  { %vm5816_vm4 = vmand %vm4748_vm13, %vm4761_vm15  ;;  %v4780_v41 = vsel %vm4748_vm13, 0, %v4926_v8  ;;  %v4768_v47 = vsel %vm4748_vm13, 2139095040, %v4927_v44 }
 0x526   :  { %v4753_v20 = vtrunc.f32 %v4744_v17  ;;  %vm4745_vm11 = vcmp.eq.f32.partialorder %v4744_v17, 2139095040  ;;  %vm4750_vm12 = vcmp.ne.f32.partialorder %v2424_v16, %v4749_v45  ;;  %vm5821_vm5 = vmxor %vm4748_vm13, %vm4764_vm2  ;;  %v4781_v7 = vxor.u32 2147483648, %v4780_v41 }
 0x527   :  { %vm4751_vm14 = vmor %vm4750_vm12, %vm4745_vm11  ;;  %vm4752_vm12 = vcmp.lt.f32.partialorder %v4744_v17, 1266679808  ;;  %vm4762_vm13 = vcmp.eq.f32.partialorder %v2420_v11, 1065353216 }
 0x528   :  { %v4754_v48 = vcvt.f32.s32 %v4753_v20  ;;  %vm4757_vm6 = vmneg %vm4751_vm14  ;;  %v6036_v20 = vld [vmem:[#allocation12_spill] sm:$0xff] }
 0x529   :  { %vm4775_vm10 = vmor %vm5816_vm4, %vm5821_vm5  ;;  %vm4777_vm4 = vcmp.eq.f32.partialorder %v2420_v11, 3212836864  ;;  %vm4786_vm5 = vcmp.ne.f32.partialorder %v2424_v16, %v2424_v16 }
 0x52a   :  { %v4755_v50 = vand.u32 1, %v4754_v48  ;;  %vm4766_vm0 = vmand %vm4760_vm9, %vm4751_vm14  ;;  %v4776_v56 = vsel %vm4775_vm10, 2139095040, %v4927_v44  ;;  %vm4765_vm14 = vcmp.eq.f32.partialorder %v4740_v15, 2139095040  ;;  %vm4747_vm10 = vcmp.eq.f32.partialorder %v2424_v16, 1065353216  ;;  %v6035_v15 = vld [vmem:[#allocation11_spill] sm:$0xff] }
 0x52b   :  { %v4838_v24 = vpop.eup %4837  ;;  %v4778_v19 = vsel %vm4777_vm4, 1065353216, %v4776_v56 }
 0x52c   :  { %v4742_v25 = vmul.f32 %v4838_v24, %v2424_v16  ;;  %vm4756_vm1 = vcmp.eq.s32.totalorder %v4755_v50, 1 }
 0x52d   :  { %vm4758_vm8 = vmand %vm4756_vm1, %vm4757_vm6  ;;  %vm4763_vm1 = vcmp.lt.s32.totalorder %v2420_v11, 0  ;;  %vm4746_vm6 = vcmp.eq.f32.partialorder %v2424_v16, 0 }
 0x52e   :  { %4839 = vpow2.f32 %v4742_v25  ;;  %vm4759_vm3 = vmand %vm4752_vm12, %vm4758_vm8  ;;  %v6037_v25 = vld [vmem:[#allocation13_spill] sm:$0xff] }
 0x52f   :  { %v4782_v34 = vsel %vm4759_vm3, %v4781_v7, %v4780_v41  ;;  %vm4770_vm2 = vmand %vm4763_vm1, %vm4759_vm3  ;;  %vm2434_vm3 = vcmask 130048  }
 0x530   :  { %v4783_v0 = vsel %vm4760_vm9, %v4782_v34, %v4780_v41  ;;  %vm6032_vm9 = vmmov 0  }
 0x53b   :  { %v4840_v42 = vpop.eup %4839 }
 0x53c   :  { %v4767_v12 = vsel %vm4766_vm0, 2143289344, %v4840_v42  ;;  %vm4785_vm0 = vcmp.ne.f32.partialorder %v2420_v11, %v2420_v11 }
 0x53d   :  { %v4769_v53 = vsel %vm4761_vm15, %v4768_v47, %v4767_v12  ;;  %vm4787_vm8 = vmor %vm4785_vm0, %vm4786_vm5 }
 0x53e   :  { %v4771_v59 = vxor.u32 2147483648, %v4769_v53  ;;  %vm4789_vm15 = vmor %vm4762_vm13, %vm4746_vm6 }
 0x540   :  { %v4772_v43 = vsel %vm4770_vm2, %v4771_v59, %v4769_v53 }
 0x541   :  { %v4779_v35 = vsel %vm4745_vm11, %v4778_v19, %v4772_v43  ;;  %vm6031_vm11 = vcmask 64512  }
 0x542   :  { %v4784_v30 = vsel %vm4765_vm14, %v4783_v0, %v4779_v35  ;;  %v2899_v54 = vsel %vm6031_vm11, %v2898_v49, 0 }
 0x543   :  { %v4788_v1 = vsel %vm4787_vm8, 2143289344, %v4784_v30  ;;  %v5855_v57 = vand.u32 4294901760, %v2899_v54 }
 0x544   :  { %v4790_v13 = vsel %vm4789_vm15, 1065353216, %v4788_v1 }
 0x545   :  { %v4791_v14 = vsel %vm4747_vm10, %v2420_v11, %v4790_v13  ;;  %v2968_v62 = vsub.f32 %v2899_v54, %v5855_v57 }
 0x546   :  { %v2427_v58 = vsel %vm2359_vm7, %v4791_v14, 0.0 }
 0x547   :  { %2428 = vadd.xlane.f32.xlu1 %v2427_v58  ;;  %v2969_v5 = vand.u32 4294901760, %v2968_v62 }
 0x549   :  { %v2970_v10 = vsub.f32 %v2968_v62, %v2969_v5 }
 0x54b   :  { %v2971_v16 = vand.u32 4294901760, %v2970_v10 }
 0x5d0   :  { %v2429_v31 = vpop.xlane.xlu1 %2428 }
 0x5d1   :  { %v2430_v32 = vadd.f32 1e-16, %v2429_v31 }
 0x5d3   :  { %4841 = vrcp.f32 %v2430_v32 }
 0x5e0   :  { %v4842_v36 = vpop.eup %4841 }
 0x5e1   :  { %v2432_v38 = vmul.f32 %v4842_v36, %v4791_v14 }
 0x5e3   :  { %v2436_v39 = vsel %vm2434_vm3, %v2432_v38, 0  ;;  %2433 = vst.msk [vmem:[#allocation5] sm:$0x3] %vm2359_vm7, %v2432_v38  ;;  %vm6034_vm7 = vmmov %vm6031_vm11 }
 0x5e4   :  { %v2505_v51 = vand.u32 4294901760, %v2436_v39  ;;  %v3350_v9 = vsel %vm6034_vm7, %v3349_v3, 0 }
 0x5e5   :  { %v3418_v11 = vand.u32 4294901760, %v3350_v9 }
 0x5e6   :  { %v2506_v52 = vsub.f32 %v2436_v39, %v2505_v51  ;;  %4650 = vmatmul.mubr.f32.vlgmr.msra.gmra.mxu1 %v2505_v51 }
 0x5e7   :  { %4660 = vmatpush3.msra.mxu1 %v2467_v63  ;;  %4663 = vmatprep.mubr.msk.f32.mxu1 %vm6032_vm9, %v6004_v46  ;;  %v3419_v17 = vsub.f32 %v3350_v9, %v3418_v11 }
 0x5e8   :  { %4661 = vmatprep.subr.mxu1 %v6004_v46  ;;  %v2507_v55 = vand.u32 4294901760, %v2506_v52 }
 0x5e9   :  { %4662 = vmatpush3.msra.mxu1 %v2470_v33  ;;  %v3420_v24 = vand.u32 4294901760, %v3419_v17 }
 0x5ea   :  { %4664 = vmatmul.mubr.f32.vlgmr.msra.gmra.mxu1 %v2507_v55  ;;  %4673 = vmatprep.subr.mxu1 %v6004_v46  ;;  %v2508_v60 = vsub.f32 %v2506_v52, %v2507_v55 }
 0x5eb   :  { %4674 = vmatpush3.msra.mxu1 %v2467_v63  ;;  %4677 = vmatprep.mubr.msk.f32.mxu1 %vm6032_vm9, %v6004_v46  ;;  %v3421_v45 = vsub.f32 %v3419_v17, %v3420_v24 }
 0x5ec   :  { %4675 = vmatprep.subr.mxu1 %v6004_v46  ;;  %v2509_v61 = vand.u32 4294901760, %v2508_v60 }
 0x5ed   :  { %4676 = vmatpush3.msra.mxu1 %v2470_v33  ;;  %v3422_v48 = vand.u32 4294901760, %v3421_v45 }
 0x5ee   :  { %4643 = vmatmul.mubr.f32.vlgmr.msra.gmra.mxu0 %v2509_v61  ;;  %4678 = vmatmul.mubr.f32.vlgmr.msra.gmra.mxu1 %v2505_v51 }
 0x5ef   :  { %4653 = vmatpush3.msra.mxu0 %v2545_v21  ;;  %4685 = vmatprep.subr.mxu1 %v6004_v46 }
 0x5f0   :  { %4654 = vmatprep.subr.mxu0 %v6004_v46  ;;  %4656 = vmatprep.mubr.msk.f32.mxu0 %vm6032_vm9, %v6004_v46 }
 0x5f1   :  { %4655 = vmatpush3.msra.mxu0 %v5842_v37  ;;  %4686 = vmatpush3.msra.mxu1 %v6033_v4 }
 0x5f2   :  { %4666 = vmatprep.subr.mxu0 %v6004_v46  ;;  %4687 = vmatprep.mubr.msk.f32.mxu1 %vm6032_vm9, %v6004_v46 }
 0x5f3   :  { %4657 = vmatmul.mubr.f32.vlgmr.msra.gmra.mxu0 %v2506_v52  ;;  %4688 = vmatmul.mubr.f32.vlgmr.msra.gmra.mxu1 %v5855_v57 }
 0x5f4   :  { %4667 = vmatpush3.msra.mxu0 %v2546_v22  ;;  %4695 = vmatprep.subr.mxu1 %v6004_v46 }
 0x5f5   :  { %4668 = vmatprep.subr.mxu0 %v6004_v46  ;;  %4670 = vmatprep.mubr.msk.f32.mxu0 %vm6032_vm9, %v6004_v46 }
 0x5f6   :  { %4669 = vmatpush3.msra.mxu0 %v2553_v23  ;;  %4696 = vmatpush3.msra.mxu1 %v6035_v15 }
 0x5f7   :  { %4680 = vmatprep.subr.mxu0 %v6004_v46  ;;  %4697 = vmatprep.mubr.msk.f32.mxu1 %vm6032_vm9, %v6004_v46 }
 0x5f8   :  { %4671 = vmatmul.mubr.f32.vlgmr.msra.gmra.mxu0 %v2505_v51  ;;  %4698 = vmatmul.mubr.f32.vlgmr.msra.gmra.mxu1 %v2969_v5 }
 0x5f9   :  { %4681 = vmatpush3.msra.mxu0 %v6035_v15  ;;  %4705 = vmatprep.subr.mxu1 %v6004_v46 }
 0x5fa   :  { %4682 = vmatprep.mubr.msk.f32.mxu0 %vm6032_vm9, %v6004_v46  ;;  %4690 = vmatprep.subr.mxu0 %v6004_v46 }
 0x5fb   :  { %4706 = vmatpush3.msra.mxu1 %v6035_v15  ;;  %4707 = vmatprep.mubr.msk.f32.mxu1 %vm6032_vm9, %v6004_v46 }
 0x5fc   :  { %4683 = vmatmul.mubr.f32.vlgmr.msra.gmra.mxu0 %v2971_v16  ;;  %4708 = vmatmul.mubr.f32.vlgmr.msra.gmra.mxu1 %v5855_v57 }
 0x5fd   :  { %4691 = vmatpush3.msra.mxu0 %v6036_v20  ;;  %4715 = vmatprep.subr.mxu1 %v6004_v46 }
 0x5fe   :  { %4692 = vmatprep.mubr.msk.f32.mxu0 %vm6032_vm9, %v6004_v46  ;;  %4700 = vmatprep.subr.mxu0 %v6004_v46 }
 0x5ff   :  { %4716 = vmatpush3.msra.mxu1 %v6033_v4  ;;  %4717 = vmatprep.mubr.msk.f32.mxu1 %vm6032_vm9, %v6004_v46 }
 0x600   :  { %4693 = vmatmul.mubr.f32.vlgmr.msra.gmra.mxu0 %v2968_v62  ;;  %4718 = vmatmul.mubr.f32.vlgmr.msra.gmra.mxu1 %v3418_v11 }
 0x601   :  { %4701 = vmatpush3.msra.mxu0 %v6037_v25  ;;  %4725 = vmatprep.subr.mxu1 %v6004_v46 }
 0x602   :  { %4702 = vmatprep.mubr.msk.f32.mxu0 %vm6032_vm9, %v6004_v46  ;;  %4710 = vmatprep.subr.mxu0 %v6004_v46 }
 0x603   :  { %4726 = vmatpush3.msra.mxu1 %v6035_v15  ;;  %4727 = vmatprep.mubr.msk.f32.mxu1 %vm6032_vm9, %v6004_v46 }
 0x604   :  { %4703 = vmatmul.mubr.f32.vlgmr.msra.gmra.mxu0 %v5855_v57  ;;  %4728 = vmatmul.mubr.f32.vlgmr.msra.gmra.mxu1 %v3420_v24 }
 0x605   :  { %4711 = vmatpush3.msra.mxu0 %v6035_v15  ;;  %4735 = vmatprep.subr.mxu1 %v6004_v46 }
 0x606   :  { %4712 = vmatprep.mubr.msk.f32.mxu0 %vm6032_vm9, %v6004_v46  ;;  %4720 = vmatprep.subr.mxu0 %v6004_v46 }
 0x607   :  { %4736 = vmatpush3.msra.mxu1 %v6035_v15  ;;  %4737 = vmatprep.mubr.msk.f32.mxu1 %vm6032_vm9, %v6004_v46 }
 0x608   :  { %4713 = vmatmul.mubr.f32.vlgmr.msra.gmra.mxu0 %v3422_v48  ;;  %4738 = vmatmul.mubr.f32.vlgmr.msra.gmra.mxu1 %v3418_v11 }
 0x609   :  { %4721 = vmatpush3.msra.mxu0 %v6036_v20  ;;  %4722 = vmatprep.mubr.msk.f32.mxu0 %vm6032_vm9, %v6004_v46 }
 0x60a   :  { %4730 = vmatprep.subr.mxu0 %v6004_v46 }
 0x60c   :  { %4723 = vmatmul.mubr.f32.vlgmr.msra.gmra.mxu0 %v3419_v17 }
 0x60d   :  { %4731 = vmatpush3.msra.mxu0 %v6037_v25  ;;  %4732 = vmatprep.mubr.msk.f32.mxu0 %vm6032_vm9, %v6004_v46 }
 0x610   :  { %4733 = vmatmul.mubr.f32.vlgmr.msra.gmra.mxu0 %v3418_v11 }
 0x611   :  { %4875 = shalt.err (!%p4872_p9)
}
 0x612   :  { %3812 = dma.vmem_to_hbm [thread:$0]  %s3810_s18, 32, %s5936_s8, [#allocation4]   ;;  %v4843_v62 = vld [vmem:[#allocation2] sm:$0x3] }
 0x613   :  { %s4929_s8 = smov [#allocation6]  }
 0x614   :  { %s3819_s22 = sshll.u32 %s4929_s8, 4  ;;  %s3820_s22 = int_to_ptr.vmem [resolvable:$true] %s3819_s22 }
 0x615   :  { %s4884_s0 = scalar_lea.vmem %s3820_s22, 32  ;;  %p4889_p11 = scmp.lt.s32.totalorder %s3820_s22, %s3820_s22 }
 0x616   :  { %p4885_p10 = scmp.ne.s32.totalorder %s3820_s22, %s4884_s0  ;;  %p4890_p12 = scmp.lt.s32.totalorder %s4884_s0, %s4884_s0 }
 0x618   :  { %p4891_p13 = por %p4890_p12, %p4889_p11 }
 0x61a   :  { %p4892_p0 = pnand %p4891_p13, %p4885_p10 }
 0x6a6   :  { %v2592_v50 = vpop.f32.mrf.mxu1 }
 0x6a8   :  { %v4651_v2 = vpop.f32.mrf.mxu1 }
 0x6aa   :  { %v2743_v6 = vpop.f32.mrf.mxu1 }
 0x6ac   :  { %v4665_v8 = vpop.f32.mrf.mxu1 }
 0x6ae   :  { %v2511_v46 = vpop.f32.mrf.mxu0  ;;  %v2893_v41 = vpop.f32.mrf.mxu1 }
 0x6af   :  { %v2593_v22 = vadd.f32 %v2592_v50, %v2511_v46 }
 0x6b0   :  { %v4644_v42 = vpop.f32.mrf.mxu0  ;;  %v4679_v12 = vpop.f32.mrf.mxu1 }
 0x6b3   :  { %v2668_v44 = vpop.f32.mrf.mxu0  ;;  %v3049_v47 = vpop.f32.mrf.mxu1 }
 0x6b4   :  { %v2669_v28 = vadd.f32 %v2668_v44, %v2593_v22 }
 0x6b5   :  { %v4658_v7 = vpop.f32.mrf.mxu0  ;;  %v4689_v53 = vpop.f32.mrf.mxu1 }
 0x6b6   :  { %v2744_v39 = vadd.f32 %v2743_v6, %v2669_v28 }
 0x6b8   :  { %v2820_v56 = vpop.f32.mrf.mxu0  ;;  %v3197_v59 = vpop.f32.mrf.mxu1 }
 0x6b9   :  { %v2821_v57 = vadd.f32 %v2820_v56, %v2744_v39 }
 0x6ba   :  { %v4672_v34 = vpop.f32.mrf.mxu0  ;;  %v4699_v43 = vpop.f32.mrf.mxu1 }
 0x6bb   :  { %v2894_v5 = vadd.f32 %v2893_v41, %v2821_v57 }
 0x6bc   :  { %v2973_v19 = vpop.f32.mrf.mxu0  ;;  %v3343_v35 = vpop.f32.mrf.mxu1 }
 0x6bd   :  { %v3050_v14 = vadd.f32 %v3049_v47, %v2973_v19 }
 0x6be   :  { %v4684_v0 = vpop.f32.mrf.mxu0  ;;  %v4709_v30 = vpop.f32.mrf.mxu1 }
 0x6c0   :  { %v3123_v1 = vpop.f32.mrf.mxu0  ;;  %v3500_v13 = vpop.f32.mrf.mxu1 }
 0x6c1   :  { %v3124_v40 = vadd.f32 %v3123_v1, %v3050_v14 }
 0x6c2   :  { %v4694_v58 = vpop.f32.mrf.mxu0  ;;  %v4719_v18 = vpop.f32.mrf.mxu1 }
 0x6c3   :  { %v3198_v23 = vadd.f32 %v3197_v59, %v3124_v40 }
 0x6c4   :  { %v3271_v63 = vpop.f32.mrf.mxu0  ;;  %v3648_v33 = vpop.f32.mrf.mxu1 }
 0x6c5   :  { %v3272_v32 = vadd.f32 %v3271_v63, %v3198_v23 }
 0x6c6   :  { %v4704_v21 = vpop.f32.mrf.mxu0  ;;  %v4729_v37 = vpop.f32.mrf.mxu1 }
 0x6c7   :  { %v3344_v52 = vadd.f32 %v3343_v35, %v3272_v32 }
 0x6c8   :  { %v3424_v26 = vpop.f32.mrf.mxu0  ;;  %v3794_v27 = vpop.f32.mrf.mxu1 }
 0x6c9   :  { %v3501_v36 = vadd.f32 %v3500_v13, %v3424_v26  ;;  %v3798_v3 = vmul.f32 %v4843_v62, %v3344_v52 }
 0x6ca   :  { %v4714_v29 = vpop.f32.mrf.mxu0  ;;  %v4739_v31 = vpop.f32.mrf.mxu1 }
 0x6cc   :  { %v3574_v38 = vpop.f32.mrf.mxu0 }
 0x6cd   :  { %v3575_v49 = vadd.f32 %v3574_v38, %v3501_v36 }
 0x6ce   :  { %v4724_v51 = vpop.f32.mrf.mxu0 }
 0x6cf   :  { %v3649_v54 = vadd.f32 %v3648_v33, %v3575_v49 }
 0x6d0   :  { %v3722_v55 = vpop.f32.mrf.mxu0 }
 0x6d1   :  { %v3723_v60 = vadd.f32 %v3722_v55, %v3649_v54 }
 0x6d2   :  { %v4734_v61 = vpop.f32.mrf.mxu0 }
 0x6d3   :  { %v3795_v4 = vadd.f32 %v3794_v27, %v3723_v60 }
 0x6d5   :  { %v3799_v9 = vsub.f32 %v3795_v4, %v3798_v3 }
 0x6d7   :  { %v3800_v10 = vmul.f32 %v3799_v9, %v2894_v5 }
 0x6d9   :  { %v3801_v11 = vadd.f32 %v4843_v62, %v3800_v10 }
 0x6db   :  { %3802 = vst [vmem:[#allocation6] sm:$0x3] %v3801_v11 }
 0x6dc   :  { %4895 = shalt.err (!%p4892_p0)
}
 0x6dd   :  { %3822 = dma.vmem_to_hbm [thread:$0]  %s3820_s22, 32, %s5937_s9, [#allocation7]  }
 0x6de   :  { %4906 = dma.done.wait [#allocation4], 32  }
 0x6df   :  { %4907 = vsyncadd [#allocation4], 4294967264 }
 0x6e0   :  { %4908 = dma.done.wait [#allocation7], 32  }
 0x6e1   :  { %4909 = vsyncadd [#allocation7], 4294967264 }
 0x6e2   :  { %3829 = vsyncpa [#allocation3], 1 }
 0x6e3   :  { %3830 = vsyncpa [#allocation4], 1 }
 0x6e4   :  { %3831 = vsyncpa [#allocation7], 1 }

</bundles_post_ra>
